<compile_context>
chip_gen: v7x
topology: tpu7x:2x2x1
jax: 0.10.0
libtpu: 0.0.40
codegen_flags: <defaults>
</compile_context>

<pallas_src>
import functools

import jax
import jax.numpy as jnp
from jax.experimental import pallas as pl
from jax.experimental.pallas import tpu as pltpu

PAD_ROWS = 8  # left/right zero rows in the VMEM staging buffer (>= max TCN dilation)


# ----------------------------------------------------------------------------
# Fused Pallas kernel (one grid step == one batch element)
# ----------------------------------------------------------------------------
def _make_fused_kernel(T, n_blocks, pad=PAD_ROWS, compute_dtype=jnp.bfloat16):
    """T = time steps after the stem (L // 4); n_blocks = number of TCN blocks."""

    def kernel(x4_ref, w1e_ref, w1o1_ref, w1o2_ref, b1_ref,
               w2_ref, b2_ref, tcnw_ref, tcnb_ref, wf_ref, bf_ref,
               o_ref, buf):
        def mm(a, w):  # bf16 MXU matmul, f32 accumulation
            return jnp.dot(a.astype(compute_dtype), w,
                           preferred_element_type=jnp.float32)

        # zero-pad rows of the staging buffer implement all conv/pool paddings
        buf[...] = jnp.zeros_like(buf)

        # ---- stem: Conv1d(224,32,k=4,s=2,p=1)+BN+ReLU + MaxPool(2,2), fused.
        # x4 rows pack 4 consecutive padded time steps (896 = 4*224 channels);
        # even/odd conv outputs are two matmuls against re-blocked weights and the
        # stride-2 max-pool is just max(even, odd).
        xa = x4_ref[pl.ds(0, T), :]
        xb = x4_ref[pl.ds(1, T), :]
        b1 = b1_ref[...]
        h_even = mm(xa, w1e_ref[...]) + b1
        h_odd = mm(xa, w1o1_ref[...]) + mm(xb, w1o2_ref[...]) + b1
        act = jnp.maximum(jnp.maximum(h_even, h_odd), 0.0)   # ReLU + MaxPool(2,2)
        buf[pl.ds(pad, T), :] = act

        # ---- stem: Conv1d(32,64,k=3,s=1,p=1)+BN+ReLU (Cin zero-padded 32->64)
        acc = b2_ref[...]
        for k in range(3):
            acc = acc + mm(buf[pl.ds(pad - 1 + k, T), :], w2_ref[k])
        act = jnp.maximum(acc, 0.0)
        buf[pl.ds(pad, T), :] = act

        # ---- stem: MaxPool1d(3,1,1) (+ trailing ReLU: no-op on non-negative input)
        y = jnp.maximum(jnp.maximum(buf[pl.ds(pad - 1, T), :],
                                    buf[pl.ds(pad, T), :]),
                        buf[pl.ds(pad + 1, T), :])

        # ---- TCN: n_blocks TemporalBlocks (kernel_size=2, dilation 2**i, causal).
        # TODO(synk): Dropout(0.2) is identity in eval mode; not modeled.
        h = y
        for blk in range(n_blocks):
            d = 2 ** blk
            res = y
            buf[pl.ds(pad, T), :] = y
            for ci in range(2):
                w0 = tcnw_ref[blk * 4 + ci * 2 + 0]
                w1 = tcnw_ref[blk * 4 + ci * 2 + 1]
                b = tcnb_ref[pl.ds(blk * 2 + ci, 1), :]
                h = jnp.maximum(
                    mm(buf[pl.ds(pad - d, T), :], w0)       # tap at t - d (causal)
                    + mm(buf[pl.ds(pad, T), :], w1) + b,     # tap at t
                    0.0)
                if ci == 0:
                    buf[pl.ds(pad, T), :] = h
            y = jnp.maximum(h + res, 0.0)                    # residual + ReLU

        # ---- last time step + Linear head
        buf[pl.ds(pad, T), :] = y
        y_last = buf[pl.ds(pad + T - 1, 1), :]               # (1, 64)
        o_ref[...] = (mm(y_last, wf_ref[...]) + bf_ref[...]).astype(o_ref.dtype)

    return kernel


# ----------------------------------------------------------------------------
# Parameter construction (deterministic, synthetic) + packing for the kernel
# ----------------------------------------------------------------------------
def _fold_bn(w_pt, b, gamma, beta, mean, var, eps=1e-5):
    """Fold eval-mode BatchNorm1d into a Conv1d. w_pt: (Cout, Cin, K)."""
    scale = gamma / jnp.sqrt(var + eps)
    return w_pt * scale[:, None, None], (b - mean) * scale + beta


def _fold_weight_norm(v, g):
    """weight_norm (dim=0): w = g * v / ||v||_(Cin,K).  v: (Cout, Cin, K)."""
    norm = jnp.sqrt(jnp.sum(v * v, axis=(1, 2), keepdims=True))
    return g[:, None, None] * v / norm


def _to_kio(w_pt):
    """(Cout, Cin, K) -> (K, Cin, Cout)."""
    return jnp.transpose(w_pt, (2, 1, 0))


def init_params(key, num_classes=9):
    keys = jax.random.split(key, 24)
    ki = iter(range(24))
    nrm = lambda k, s, std: std * jax.random.normal(k, s, jnp.float32)

    p = {}
    # ---- conv stem: Conv1d(224,32,4,2,1)+BN(32); Conv1d(32,64,3,1,1)+BN(64)
    w = nrm(keys[next(ki)], (32, 224, 4), 0.05)
    b = nrm(keys[next(ki)], (32,), 0.05)
    w, b = _fold_bn(w, b, jnp.ones(32), jnp.zeros(32), jnp.zeros(32), jnp.ones(32))
    p["c1_w"], p["c1_b"] = _to_kio(w), b          # (4,224,32), (32,)

    w = nrm(keys[next(ki)], (64, 32, 3), 0.05)
    b = nrm(keys[next(ki)], (64,), 0.05)
    w, b = _fold_bn(w, b, jnp.ones(64), jnp.zeros(64), jnp.zeros(64), jnp.ones(64))
    p["c2_w"], p["c2_b"] = _to_kio(w), b          # (3,32,64), (64,)

    # ---- TCN: 4 TemporalBlocks, 64->64, kernel_size=2, dilation 2**i
    p["tcn"] = []
    for _ in range(4):
        v1 = nrm(keys[next(ki)], (64, 64, 2), 0.01)
        b1 = nrm(keys[next(ki)], (64,), 0.01)
        v2 = nrm(keys[next(ki)], (64, 64, 2), 0.01)
        b2 = nrm(keys[next(ki)], (64,), 0.01)
        g1 = jnp.sqrt(jnp.sum(v1 * v1, axis=(1, 2)))  # weight_norm init: g = ||v||
        g2 = jnp.sqrt(jnp.sum(v2 * v2, axis=(1, 2)))
        p["tcn"].append({"w1": _to_kio(_fold_weight_norm(v1, g1)), "b1": b1,
                         "w2": _to_kio(_fold_weight_norm(v2, g2)), "b2": b2})

    # ---- fc: Linear(64, num_classes)
    wfc = nrm(keys[next(ki)], (num_classes, 64), 0.1)
    bfc = nrm(keys[next(ki)], (num_classes,), 0.1)
    p["fc_w"], p["fc_b"] = jnp.transpose(wfc, (1, 0)), bfc
    return p


def pack_params(p, compute_dtype=jnp.bfloat16):
    """Re-block weights for the fused kernel (done once, outside the kernel)."""
    w1 = p["c1_w"]                                 # (4, 224, 32)
    K, cin, c1 = w1.shape
    C = p["c2_w"].shape[2]                         # 64
    zeros2 = jnp.zeros((2 * cin, c1), w1.dtype)
    # even outputs: full 4-tap contraction over one quad row
    we = w1.reshape(K * cin, c1)
    # odd outputs: taps 0/1 hit quad positions 2/3 of row t, taps 2/3 hit 0/1 of row t+1
    wo1 = jnp.concatenate([zeros2, w1[0], w1[1]], axis=0)
    wo2 = jnp.concatenate([w1[2], w1[3], zeros2], axis=0)
    padc = lambda m: jnp.pad(m, ((0, 0), (0, C - c1)))   # Cout 32 -> 64 (zero cols)

    # TCN weights packed as (4*n_blocks, 64, 64): index = blk*4 + conv*2 + tap
    tcn_w = jnp.concatenate(
        [jnp.concatenate([blk["w1"], blk["w2"]], axis=0) for blk in p["tcn"]], axis=0)
    tcn_b = jnp.stack(
        sum([[blk["b1"], blk["b2"]] for blk in p["tcn"]], []), axis=0)  # (2*n, 64)

    return {
        "w1e":  padc(we).astype(compute_dtype),             # (896, 64)
        "w1o1": padc(wo1).astype(compute_dtype),             # (896, 64)
        "w1o2": padc(wo2).astype(compute_dtype),             # (896, 64)
        "b1":   jnp.pad(p["c1_b"], (0, C - c1)).reshape(1, C).astype(jnp.float32),
        "w2":   jnp.pad(p["c2_w"], ((0, 0), (0, C - c1), (0, 0))).astype(compute_dtype),
        "b2":   p["c2_b"].reshape(1, C).astype(jnp.float32),
        "tcn_w": tcn_w.astype(compute_dtype),                # (16, 64, 64)
        "tcn_b": tcn_b.astype(jnp.float32),                  # (8, 64)
        "fc_w": p["fc_w"].astype(compute_dtype),              # (64, num_classes)
        "fc_b": p["fc_b"].reshape(1, -1).astype(jnp.float32),
    }


# ----------------------------------------------------------------------------
# Forward pass: one fused pallas_call
# ----------------------------------------------------------------------------
def conv1dtcn_forward(packed, x):
    """x: (B, 1, 224, L) float32 -> (B, num_classes)."""
    B, one, cin, L = x.shape
    assert one == 1 and L % 4 == 0 and L >= 8, (one, L)
    T = L // 4                      # time steps after the stem (conv s=2 + pool s=2)
    Cq = 4 * cin                    # quad-packed channel width (896)
    C = packed["b2"].shape[1]       # trunk width (64)
    n_cls = packed["fc_w"].shape[1]
    n_blocks = packed["tcn_b"].shape[0] // 2

    # (B,1,224,L) -> (B,L,224) time-major; pad time (1 conv-left, 1 conv-right,
    # +2 alignment zeros); pack 4 consecutive steps per row -> (B, T+1, 896).
    y = jnp.transpose(x[:, 0], (0, 2, 1))
    y = jnp.pad(y, ((0, 0), (1, 3), (0, 0)))
    x4 = y.reshape(B, T + 1, Cq).astype(jnp.float32)

    kernel = _make_fused_kernel(T, n_blocks)
    zero2 = lambda b: (0, 0)
    zero3 = lambda b: (0, 0, 0)

    out = pl.pallas_call(
        kernel,
        grid=(B,),
        in_specs=[
            pl.BlockSpec((None, T + 1, Cq), lambda b: (b, 0, 0)),   # x4 (per batch)
            pl.BlockSpec((Cq, C), zero2),                           # w1e
            pl.BlockSpec((Cq, C), zero2),                           # w1o1
            pl.BlockSpec((Cq, C), zero2),                           # w1o2
            pl.BlockSpec((1, C), zero2),                            # b1
            pl.BlockSpec((3, C, C), zero3),                         # w2
            pl.BlockSpec((1, C), zero2),                            # b2
            pl.BlockSpec((4 * n_blocks, C, C), zero3),              # tcn_w
            pl.BlockSpec((2 * n_blocks, C), zero2),                 # tcn_b
            pl.BlockSpec((C, n_cls), zero2),                        # fc_w
            pl.BlockSpec((1, n_cls), zero2),                        # fc_b
        ],
        out_specs=pl.BlockSpec((None, 1, n_cls), lambda b: (b, 0, 0)),
        out_shape=jax.ShapeDtypeStruct((B, 1, n_cls), jnp.float32),
        scratch_shapes=[pltpu.VMEM((2 * PAD_ROWS + T, C), jnp.float32)],
        compiler_params=pltpu.CompilerParams(dimension_semantics=("parallel",)),
    )(x4, packed["w1e"], packed["w1o1"], packed["w1o2"], packed["b1"],
      packed["w2"], packed["b2"], packed["tcn_w"], packed["tcn_b"],
      packed["fc_w"], packed["fc_b"])
    return out[:, 0, :]


# ----------------------------------------------------------------------------
if __name__ == "__main__":
    B, Cin, L, num_classes = 2, 224, 64, 9
    key = jax.random.PRNGKey(0)
    kx, kp = jax.random.split(key)
    x = jax.random.normal(kx, (B, 1, Cin, L), jnp.float32)
    params = init_params(kp, num_classes)
    packed = pack_params(params)

    fwd = jax.jit(functools.partial(conv1dtcn_forward, packed))
    out = fwd(x)
    jax.block_until_ready(out)
    assert out.shape == (B, num_classes), out.shape
    print("KERNEL_OK")
</pallas_src>

<mosaic_0001>
module attributes {stable_mosaic.version = 11 : i64} {
  func.func @kernel(%arg0: i32, %arg1: memref<1x17x896xf32, #tpu.memory_space<vmem>>, %arg2: memref<896x64xbf16, #tpu.memory_space<vmem>>, %arg3: memref<896x64xbf16, #tpu.memory_space<vmem>>, %arg4: memref<896x64xbf16, #tpu.memory_space<vmem>>, %arg5: memref<1x64xf32, #tpu.memory_space<vmem>>, %arg6: memref<3x64x64xbf16, #tpu.memory_space<vmem>>, %arg7: memref<1x64xf32, #tpu.memory_space<vmem>>, %arg8: memref<16x64x64xbf16, #tpu.memory_space<vmem>>, %arg9: memref<8x64xf32, #tpu.memory_space<vmem>>, %arg10: memref<64x9xbf16, #tpu.memory_space<vmem>>, %arg11: memref<1x9xf32, #tpu.memory_space<vmem>>, %arg12: memref<1x1x9xf32, #tpu.memory_space<vmem>>, %arg13: memref<32x64xf32, #tpu.memory_space<vmem>>) attributes {dimension_semantics = [#tpu.dimension_semantics<parallel>], iteration_bounds = array<i64: 2>, scalar_prefetch = 0 : i64, scratch_operands = 1 : i64, tpu.core_type = #tpu.core_type<tc>, window_params = [{transform_indices = @transform_0, window_bounds = array<i64: 1, 17, 896>}, {pipeline_mode = #tpu.pipeline_mode<synchronous>, transform_indices = @transform_1, window_bounds = array<i64: 896, 64>}, {pipeline_mode = #tpu.pipeline_mode<synchronous>, transform_indices = @transform_2, window_bounds = array<i64: 896, 64>}, {pipeline_mode = #tpu.pipeline_mode<synchronous>, transform_indices = @transform_3, window_bounds = array<i64: 896, 64>}, {pipeline_mode = #tpu.pipeline_mode<synchronous>, transform_indices = @transform_4, window_bounds = array<i64: 1, 64>}, {pipeline_mode = #tpu.pipeline_mode<synchronous>, transform_indices = @transform_5, window_bounds = array<i64: 3, 64, 64>}, {pipeline_mode = #tpu.pipeline_mode<synchronous>, transform_indices = @transform_6, window_bounds = array<i64: 1, 64>}, {pipeline_mode = #tpu.pipeline_mode<synchronous>, transform_indices = @transform_7, window_bounds = array<i64: 16, 64, 64>}, {pipeline_mode = #tpu.pipeline_mode<synchronous>, transform_indices = @transform_8, window_bounds = array<i64: 8, 64>}, {pipeline_mode = #tpu.pipeline_mode<synchronous>, transform_indices = @transform_9, window_bounds = array<i64: 64, 9>}, {pipeline_mode = #tpu.pipeline_mode<synchronous>, transform_indices = @transform_10, window_bounds = array<i64: 1, 9>}, {transform_indices = @transform_11, window_bounds = array<i64: 1, 1, 9>}]} {
    %cst = arith.constant 0.000000e+00 : f32
    %0 = vector.broadcast %cst : f32 to vector<32x64xf32>
    %c0 = arith.constant 0 : index
    %c0_0 = arith.constant 0 : index
    %1 = vector.load %arg13[%c0, %c0_0] : memref<32x64xf32, #tpu.memory_space<vmem>>, vector<32x64xf32>
    tpu.vector_store %arg13[%c0, %c0_0], %0 {strides = array<i32>} : memref<32x64xf32, #tpu.memory_space<vmem>>, vector<32x64xf32>,
    %c0_1 = arith.constant 0 : index
    %c0_2 = arith.constant 0 : index
    %c0_3 = arith.constant 0 : index
    %2 = vector.load %arg1[%c0_1, %c0_2, %c0_3] : memref<1x17x896xf32, #tpu.memory_space<vmem>>, vector<1x16x896xf32>
    %3 = vector.shape_cast %2 : vector<1x16x896xf32> to vector<16x896xf32>
    %c0_4 = arith.constant 0 : index
    %c1 = arith.constant 1 : index
    %c0_5 = arith.constant 0 : index
    %4 = vector.load %arg1[%c0_4, %c1, %c0_5] : memref<1x17x896xf32, #tpu.memory_space<vmem>>, vector<1x16x896xf32>
    %5 = vector.shape_cast %4 : vector<1x16x896xf32> to vector<16x896xf32>
    %c0_6 = arith.constant 0 : index
    %c0_7 = arith.constant 0 : index
    %6 = vector.load %arg5[%c0_6, %c0_7] : memref<1x64xf32, #tpu.memory_space<vmem>>, vector<1x64xf32>
    %c0_8 = arith.constant 0 : index
    %c0_9 = arith.constant 0 : index
    %7 = vector.load %arg2[%c0_8, %c0_9] : memref<896x64xbf16, #tpu.memory_space<vmem>>, vector<896x64xbf16>
    %8 = arith.truncf %3 : vector<16x896xf32> to vector<16x896xbf16>
    %cst_10 = arith.constant dense<0.000000e+00> : vector<16x64xf32>
    %9 = tpu.matmul %8, %7, %cst_10 {dimension_numbers = #tpu.dot_dimension_numbers<[1], [0], [0], [1], [0, 0, 1, 1], [], []>} : vector<16x896xbf16>, vector<896x64xbf16>, vector<16x64xf32> -> vector<16x64xf32>
    %10 = vector.broadcast %6 : vector<1x64xf32> to vector<16x64xf32>
    %11 = arith.addf %9, %10 : vector<16x64xf32>
    %c0_11 = arith.constant 0 : index
    %c0_12 = arith.constant 0 : index
    %12 = vector.load %arg3[%c0_11, %c0_12] : memref<896x64xbf16, #tpu.memory_space<vmem>>, vector<896x64xbf16>
    %13 = arith.truncf %3 : vector<16x896xf32> to vector<16x896xbf16>
    %cst_13 = arith.constant dense<0.000000e+00> : vector<16x64xf32>
    %14 = tpu.matmul %13, %12, %cst_13 {dimension_numbers = #tpu.dot_dimension_numbers<[1], [0], [0], [1], [0, 0, 1, 1], [], []>} : vector<16x896xbf16>, vector<896x64xbf16>, vector<16x64xf32> -> vector<16x64xf32>
    %c0_14 = arith.constant 0 : index
    %c0_15 = arith.constant 0 : index
    %15 = vector.load %arg4[%c0_14, %c0_15] : memref<896x64xbf16, #tpu.memory_space<vmem>>, vector<896x64xbf16>
    %16 = arith.truncf %5 : vector<16x896xf32> to vector<16x896xbf16>
    %cst_16 = arith.constant dense<0.000000e+00> : vector<16x64xf32>
    %17 = tpu.matmul %16, %15, %cst_16 {dimension_numbers = #tpu.dot_dimension_numbers<[1], [0], [0], [1], [0, 0, 1, 1], [], []>} : vector<16x896xbf16>, vector<896x64xbf16>, vector<16x64xf32> -> vector<16x64xf32>
    %18 = arith.addf %14, %17 : vector<16x64xf32>
    %19 = vector.broadcast %6 : vector<1x64xf32> to vector<16x64xf32>
    %20 = arith.addf %18, %19 : vector<16x64xf32>
    %21 = arith.maximumf %11, %20 : vector<16x64xf32>
    %cst_17 = arith.constant 0.000000e+00 : f32
    %22 = vector.broadcast %cst_17 : f32 to vector<16x64xf32>
    %23 = arith.maximumf %21, %22 : vector<16x64xf32>
    %c8 = arith.constant 8 : index
    %c0_18 = arith.constant 0 : index
    %24 = vector.load %arg13[%c8, %c0_18] : memref<32x64xf32, #tpu.memory_space<vmem>>, vector<16x64xf32>
    tpu.vector_store %arg13[%c8, %c0_18], %23 {strides = array<i32>} : memref<32x64xf32, #tpu.memory_space<vmem>>, vector<16x64xf32>,
    %c0_19 = arith.constant 0 : index
    %c0_20 = arith.constant 0 : index
    %25 = vector.load %arg7[%c0_19, %c0_20] : memref<1x64xf32, #tpu.memory_space<vmem>>, vector<1x64xf32>
    %c7 = arith.constant 7 : index
    %c0_21 = arith.constant 0 : index
    %26 = vector.load %arg13[%c7, %c0_21] : memref<32x64xf32, #tpu.memory_space<vmem>>, vector<16x64xf32>
    %c0_22 = arith.constant 0 : index
    %c0_23 = arith.constant 0 : index
    %c0_24 = arith.constant 0 : index
    %27 = vector.load %arg6[%c0_22, %c0_23, %c0_24] : memref<3x64x64xbf16, #tpu.memory_space<vmem>>, vector<1x64x64xbf16>
    %28 = vector.shape_cast %27 : vector<1x64x64xbf16> to vector<64x64xbf16>
    %29 = arith.truncf %26 : vector<16x64xf32> to vector<16x64xbf16>
    %cst_25 = arith.constant dense<0.000000e+00> : vector<16x64xf32>
    %30 = tpu.matmul %29, %28, %cst_25 {dimension_numbers = #tpu.dot_dimension_numbers<[1], [0], [0], [1], [0, 0, 1, 1], [], []>} : vector<16x64xbf16>, vector<64x64xbf16>, vector<16x64xf32> -> vector<16x64xf32>
    %31 = vector.broadcast %25 : vector<1x64xf32> to vector<16x64xf32>
    %32 = arith.addf %31, %30 : vector<16x64xf32>
    %c8_26 = arith.constant 8 : index
    %c0_27 = arith.constant 0 : index
    %33 = vector.load %arg13[%c8_26, %c0_27] : memref<32x64xf32, #tpu.memory_space<vmem>>, vector<16x64xf32>
    %c1_28 = arith.constant 1 : index
    %c0_29 = arith.constant 0 : index
    %c0_30 = arith.constant 0 : index
    %34 = vector.load %arg6[%c1_28, %c0_29, %c0_30] : memref<3x64x64xbf16, #tpu.memory_space<vmem>>, vector<1x64x64xbf16>
    %35 = vector.shape_cast %34 : vector<1x64x64xbf16> to vector<64x64xbf16>
    %36 = arith.truncf %33 : vector<16x64xf32> to vector<16x64xbf16>
    %cst_31 = arith.constant dense<0.000000e+00> : vector<16x64xf32>
    %37 = tpu.matmul %36, %35, %cst_31 {dimension_numbers = #tpu.dot_dimension_numbers<[1], [0], [0], [1], [0, 0, 1, 1], [], []>} : vector<16x64xbf16>, vector<64x64xbf16>, vector<16x64xf32> -> vector<16x64xf32>
    %38 = arith.addf %32, %37 : vector<16x64xf32>
    %c9 = arith.constant 9 : index
    %c0_32 = arith.constant 0 : index
    %39 = vector.load %arg13[%c9, %c0_32] : memref<32x64xf32, #tpu.memory_space<vmem>>, vector<16x64xf32>
    %c2 = arith.constant 2 : index
    %c0_33 = arith.constant 0 : index
    %c0_34 = arith.constant 0 : index
    %40 = vector.load %arg6[%c2, %c0_33, %c0_34] : memref<3x64x64xbf16, #tpu.memory_space<vmem>>, vector<1x64x64xbf16>
    %41 = vector.shape_cast %40 : vector<1x64x64xbf16> to vector<64x64xbf16>
    %42 = arith.truncf %39 : vector<16x64xf32> to vector<16x64xbf16>
    %cst_35 = arith.constant dense<0.000000e+00> : vector<16x64xf32>
    %43 = tpu.matmul %42, %41, %cst_35 {dimension_numbers = #tpu.dot_dimension_numbers<[1], [0], [0], [1], [0, 0, 1, 1], [], []>} : vector<16x64xbf16>, vector<64x64xbf16>, vector<16x64xf32> -> vector<16x64xf32>
    %44 = arith.addf %38, %43 : vector<16x64xf32>
    %cst_36 = arith.constant 0.000000e+00 : f32
    %45 = vector.broadcast %cst_36 : f32 to vector<16x64xf32>
    %46 = arith.maximumf %44, %45 : vector<16x64xf32>
    %c8_37 = arith.constant 8 : index
    %c0_38 = arith.constant 0 : index
    %47 = vector.load %arg13[%c8_37, %c0_38] : memref<32x64xf32, #tpu.memory_space<vmem>>, vector<16x64xf32>
    tpu.vector_store %arg13[%c8_37, %c0_38], %46 {strides = array<i32>} : memref<32x64xf32, #tpu.memory_space<vmem>>, vector<16x64xf32>,
    %c7_39 = arith.constant 7 : index
    %c0_40 = arith.constant 0 : index
    %48 = vector.load %arg13[%c7_39, %c0_40] : memref<32x64xf32, #tpu.memory_space<vmem>>, vector<16x64xf32>
    %c8_41 = arith.constant 8 : index
    %c0_42 = arith.constant 0 : index
    %49 = vector.load %arg13[%c8_41, %c0_42] : memref<32x64xf32, #tpu.memory_space<vmem>>, vector<16x64xf32>
    %50 = arith.maximumf %48, %49 : vector<16x64xf32>
    %c9_43 = arith.constant 9 : index
    %c0_44 = arith.constant 0 : index
    %51 = vector.load %arg13[%c9_43, %c0_44] : memref<32x64xf32, #tpu.memory_space<vmem>>, vector<16x64xf32>
    %52 = arith.maximumf %50, %51 : vector<16x64xf32>
    %c8_45 = arith.constant 8 : index
    %c0_46 = arith.constant 0 : index
    %53 = vector.load %arg13[%c8_45, %c0_46] : memref<32x64xf32, #tpu.memory_space<vmem>>, vector<16x64xf32>
    tpu.vector_store %arg13[%c8_45, %c0_46], %52 {strides = array<i32>} : memref<32x64xf32, #tpu.memory_space<vmem>>, vector<16x64xf32>,
    %c0_47 = arith.constant 0 : index
    %c0_48 = arith.constant 0 : index
    %c0_49 = arith.constant 0 : index
    %54 = vector.load %arg8[%c0_47, %c0_48, %c0_49] : memref<16x64x64xbf16, #tpu.memory_space<vmem>>, vector<1x64x64xbf16>
    %55 = vector.shape_cast %54 : vector<1x64x64xbf16> to vector<64x64xbf16>
    %c1_50 = arith.constant 1 : index
    %c0_51 = arith.constant 0 : index
    %c0_52 = arith.constant 0 : index
    %56 = vector.load %arg8[%c1_50, %c0_51, %c0_52] : memref<16x64x64xbf16, #tpu.memory_space<vmem>>, vector<1x64x64xbf16>
    %57 = vector.shape_cast %56 : vector<1x64x64xbf16> to vector<64x64xbf16>
    %c0_53 = arith.constant 0 : index
    %c0_54 = arith.constant 0 : index
    %58 = vector.load %arg9[%c0_53, %c0_54] : memref<8x64xf32, #tpu.memory_space<vmem>>, vector<1x64xf32>
    %c7_55 = arith.constant 7 : index
    %c0_56 = arith.constant 0 : index
    %59 = vector.load %arg13[%c7_55, %c0_56] : memref<32x64xf32, #tpu.memory_space<vmem>>, vector<16x64xf32>
    %60 = arith.truncf %59 : vector<16x64xf32> to vector<16x64xbf16>
    %cst_57 = arith.constant dense<0.000000e+00> : vector<16x64xf32>
    %61 = tpu.matmul %60, %55, %cst_57 {dimension_numbers = #tpu.dot_dimension_numbers<[1], [0], [0], [1], [0, 0, 1, 1], [], []>} : vector<16x64xbf16>, vector<64x64xbf16>, vector<16x64xf32> -> vector<16x64xf32>
    %c8_58 = arith.constant 8 : index
    %c0_59 = arith.constant 0 : index
    %62 = vector.load %arg13[%c8_58, %c0_59] : memref<32x64xf32, #tpu.memory_space<vmem>>, vector<16x64xf32>
    %63 = arith.truncf %62 : vector<16x64xf32> to vector<16x64xbf16>
    %cst_60 = arith.constant dense<0.000000e+00> : vector<16x64xf32>
    %64 = tpu.matmul %63, %57, %cst_60 {dimension_numbers = #tpu.dot_dimension_numbers<[1], [0], [0], [1], [0, 0, 1, 1], [], []>} : vector<16x64xbf16>, vector<64x64xbf16>, vector<16x64xf32> -> vector<16x64xf32>
    %65 = arith.addf %61, %64 : vector<16x64xf32>
    %66 = vector.broadcast %58 : vector<1x64xf32> to vector<16x64xf32>
    %67 = arith.addf %65, %66 : vector<16x64xf32>
    %cst_61 = arith.constant 0.000000e+00 : f32
    %68 = vector.broadcast %cst_61 : f32 to vector<16x64xf32>
    %69 = arith.maximumf %67, %68 : vector<16x64xf32>
    %c8_62 = arith.constant 8 : index
    %c0_63 = arith.constant 0 : index
    %70 = vector.load %arg13[%c8_62, %c0_63] : memref<32x64xf32, #tpu.memory_space<vmem>>, vector<16x64xf32>
    tpu.vector_store %arg13[%c8_62, %c0_63], %69 {strides = array<i32>} : memref<32x64xf32, #tpu.memory_space<vmem>>, vector<16x64xf32>,
    %c2_64 = arith.constant 2 : index
    %c0_65 = arith.constant 0 : index
    %c0_66 = arith.constant 0 : index
    %71 = vector.load %arg8[%c2_64, %c0_65, %c0_66] : memref<16x64x64xbf16, #tpu.memory_space<vmem>>, vector<1x64x64xbf16>
    %72 = vector.shape_cast %71 : vector<1x64x64xbf16> to vector<64x64xbf16>
    %c3 = arith.constant 3 : index
    %c0_67 = arith.constant 0 : index
    %c0_68 = arith.constant 0 : index
    %73 = vector.load %arg8[%c3, %c0_67, %c0_68] : memref<16x64x64xbf16, #tpu.memory_space<vmem>>, vector<1x64x64xbf16>
    %74 = vector.shape_cast %73 : vector<1x64x64xbf16> to vector<64x64xbf16>
    %c1_69 = arith.constant 1 : index
    %c0_70 = arith.constant 0 : index
    %75 = vector.load %arg9[%c1_69, %c0_70] : memref<8x64xf32, #tpu.memory_space<vmem>>, vector<1x64xf32>
    %c7_71 = arith.constant 7 : index
    %c0_72 = arith.constant 0 : index
    %76 = vector.load %arg13[%c7_71, %c0_72] : memref<32x64xf32, #tpu.memory_space<vmem>>, vector<16x64xf32>
    %77 = arith.truncf %76 : vector<16x64xf32> to vector<16x64xbf16>
    %cst_73 = arith.constant dense<0.000000e+00> : vector<16x64xf32>
    %78 = tpu.matmul %77, %72, %cst_73 {dimension_numbers = #tpu.dot_dimension_numbers<[1], [0], [0], [1], [0, 0, 1, 1], [], []>} : vector<16x64xbf16>, vector<64x64xbf16>, vector<16x64xf32> -> vector<16x64xf32>
    %c8_74 = arith.constant 8 : index
    %c0_75 = arith.constant 0 : index
    %79 = vector.load %arg13[%c8_74, %c0_75] : memref<32x64xf32, #tpu.memory_space<vmem>>, vector<16x64xf32>
    %80 = arith.truncf %79 : vector<16x64xf32> to vector<16x64xbf16>
    %cst_76 = arith.constant dense<0.000000e+00> : vector<16x64xf32>
    %81 = tpu.matmul %80, %74, %cst_76 {dimension_numbers = #tpu.dot_dimension_numbers<[1], [0], [0], [1], [0, 0, 1, 1], [], []>} : vector<16x64xbf16>, vector<64x64xbf16>, vector<16x64xf32> -> vector<16x64xf32>
    %82 = arith.addf %78, %81 : vector<16x64xf32>
    %83 = vector.broadcast %75 : vector<1x64xf32> to vector<16x64xf32>
    %84 = arith.addf %82, %83 : vector<16x64xf32>
    %cst_77 = arith.constant 0.000000e+00 : f32
    %85 = vector.broadcast %cst_77 : f32 to vector<16x64xf32>
    %86 = arith.maximumf %84, %85 : vector<16x64xf32>
    %87 = arith.addf %86, %52 : vector<16x64xf32>
    %cst_78 = arith.constant 0.000000e+00 : f32
    %88 = vector.broadcast %cst_78 : f32 to vector<16x64xf32>
    %89 = arith.maximumf %87, %88 : vector<16x64xf32>
    %c8_79 = arith.constant 8 : index
    %c0_80 = arith.constant 0 : index
    %90 = vector.load %arg13[%c8_79, %c0_80] : memref<32x64xf32, #tpu.memory_space<vmem>>, vector<16x64xf32>
    tpu.vector_store %arg13[%c8_79, %c0_80], %89 {strides = array<i32>} : memref<32x64xf32, #tpu.memory_space<vmem>>, vector<16x64xf32>,
    %c4 = arith.constant 4 : index
    %c0_81 = arith.constant 0 : index
    %c0_82 = arith.constant 0 : index
    %91 = vector.load %arg8[%c4, %c0_81, %c0_82] : memref<16x64x64xbf16, #tpu.memory_space<vmem>>, vector<1x64x64xbf16>
    %92 = vector.shape_cast %91 : vector<1x64x64xbf16> to vector<64x64xbf16>
    %c5 = arith.constant 5 : index
    %c0_83 = arith.constant 0 : index
    %c0_84 = arith.constant 0 : index
    %93 = vector.load %arg8[%c5, %c0_83, %c0_84] : memref<16x64x64xbf16, #tpu.memory_space<vmem>>, vector<1x64x64xbf16>
    %94 = vector.shape_cast %93 : vector<1x64x64xbf16> to vector<64x64xbf16>
    %c2_85 = arith.constant 2 : index
    %c0_86 = arith.constant 0 : index
    %95 = vector.load %arg9[%c2_85, %c0_86] : memref<8x64xf32, #tpu.memory_space<vmem>>, vector<1x64xf32>
    %c6 = arith.constant 6 : index
    %c0_87 = arith.constant 0 : index
    %96 = vector.load %arg13[%c6, %c0_87] : memref<32x64xf32, #tpu.memory_space<vmem>>, vector<16x64xf32>
    %97 = arith.truncf %96 : vector<16x64xf32> to vector<16x64xbf16>
    %cst_88 = arith.constant dense<0.000000e+00> : vector<16x64xf32>
    %98 = tpu.matmul %97, %92, %cst_88 {dimension_numbers = #tpu.dot_dimension_numbers<[1], [0], [0], [1], [0, 0, 1, 1], [], []>} : vector<16x64xbf16>, vector<64x64xbf16>, vector<16x64xf32> -> vector<16x64xf32>
    %c8_89 = arith.constant 8 : index
    %c0_90 = arith.constant 0 : index
    %99 = vector.load %arg13[%c8_89, %c0_90] : memref<32x64xf32, #tpu.memory_space<vmem>>, vector<16x64xf32>
    %100 = arith.truncf %99 : vector<16x64xf32> to vector<16x64xbf16>
    %cst_91 = arith.constant dense<0.000000e+00> : vector<16x64xf32>
    %101 = tpu.matmul %100, %94, %cst_91 {dimension_numbers = #tpu.dot_dimension_numbers<[1], [0], [0], [1], [0, 0, 1, 1], [], []>} : vector<16x64xbf16>, vector<64x64xbf16>, vector<16x64xf32> -> vector<16x64xf32>
    %102 = arith.addf %98, %101 : vector<16x64xf32>
    %103 = vector.broadcast %95 : vector<1x64xf32> to vector<16x64xf32>
    %104 = arith.addf %102, %103 : vector<16x64xf32>
    %cst_92 = arith.constant 0.000000e+00 : f32
    %105 = vector.broadcast %cst_92 : f32 to vector<16x64xf32>
    %106 = arith.maximumf %104, %105 : vector<16x64xf32>
    %c8_93 = arith.constant 8 : index
    %c0_94 = arith.constant 0 : index
    %107 = vector.load %arg13[%c8_93, %c0_94] : memref<32x64xf32, #tpu.memory_space<vmem>>, vector<16x64xf32>
    tpu.vector_store %arg13[%c8_93, %c0_94], %106 {strides = array<i32>} : memref<32x64xf32, #tpu.memory_space<vmem>>, vector<16x64xf32>,
    %c6_95 = arith.constant 6 : index
    %c0_96 = arith.constant 0 : index
    %c0_97 = arith.constant 0 : index
    %108 = vector.load %arg8[%c6_95, %c0_96, %c0_97] : memref<16x64x64xbf16, #tpu.memory_space<vmem>>, vector<1x64x64xbf16>
    %109 = vector.shape_cast %108 : vector<1x64x64xbf16> to vector<64x64xbf16>
    %c7_98 = arith.constant 7 : index
    %c0_99 = arith.constant 0 : index
    %c0_100 = arith.constant 0 : index
    %110 = vector.load %arg8[%c7_98, %c0_99, %c0_100] : memref<16x64x64xbf16, #tpu.memory_space<vmem>>, vector<1x64x64xbf16>
    %111 = vector.shape_cast %110 : vector<1x64x64xbf16> to vector<64x64xbf16>
    %c3_101 = arith.constant 3 : index
    %c0_102 = arith.constant 0 : index
    %112 = vector.load %arg9[%c3_101, %c0_102] : memref<8x64xf32, #tpu.memory_space<vmem>>, vector<1x64xf32>
    %c6_103 = arith.constant 6 : index
    %c0_104 = arith.constant 0 : index
    %113 = vector.load %arg13[%c6_103, %c0_104] : memref<32x64xf32, #tpu.memory_space<vmem>>, vector<16x64xf32>
    %114 = arith.truncf %113 : vector<16x64xf32> to vector<16x64xbf16>
    %cst_105 = arith.constant dense<0.000000e+00> : vector<16x64xf32>
    %115 = tpu.matmul %114, %109, %cst_105 {dimension_numbers = #tpu.dot_dimension_numbers<[1], [0], [0], [1], [0, 0, 1, 1], [], []>} : vector<16x64xbf16>, vector<64x64xbf16>, vector<16x64xf32> -> vector<16x64xf32>
    %c8_106 = arith.constant 8 : index
    %c0_107 = arith.constant 0 : index
    %116 = vector.load %arg13[%c8_106, %c0_107] : memref<32x64xf32, #tpu.memory_space<vmem>>, vector<16x64xf32>
    %117 = arith.truncf %116 : vector<16x64xf32> to vector<16x64xbf16>
    %cst_108 = arith.constant dense<0.000000e+00> : vector<16x64xf32>
    %118 = tpu.matmul %117, %111, %cst_108 {dimension_numbers = #tpu.dot_dimension_numbers<[1], [0], [0], [1], [0, 0, 1, 1], [], []>} : vector<16x64xbf16>, vector<64x64xbf16>, vector<16x64xf32> -> vector<16x64xf32>
    %119 = arith.addf %115, %118 : vector<16x64xf32>
    %120 = vector.broadcast %112 : vector<1x64xf32> to vector<16x64xf32>
    %121 = arith.addf %119, %120 : vector<16x64xf32>
    %cst_109 = arith.constant 0.000000e+00 : f32
    %122 = vector.broadcast %cst_109 : f32 to vector<16x64xf32>
    %123 = arith.maximumf %121, %122 : vector<16x64xf32>
    %124 = arith.addf %123, %89 : vector<16x64xf32>
    %cst_110 = arith.constant 0.000000e+00 : f32
    %125 = vector.broadcast %cst_110 : f32 to vector<16x64xf32>
    %126 = arith.maximumf %124, %125 : vector<16x64xf32>
    %c8_111 = arith.constant 8 : index
    %c0_112 = arith.constant 0 : index
    %127 = vector.load %arg13[%c8_111, %c0_112] : memref<32x64xf32, #tpu.memory_space<vmem>>, vector<16x64xf32>
    tpu.vector_store %arg13[%c8_111, %c0_112], %126 {strides = array<i32>} : memref<32x64xf32, #tpu.memory_space<vmem>>, vector<16x64xf32>,
    %c8_113 = arith.constant 8 : index
    %c0_114 = arith.constant 0 : index
    %c0_115 = arith.constant 0 : index
    %128 = vector.load %arg8[%c8_113, %c0_114, %c0_115] : memref<16x64x64xbf16, #tpu.memory_space<vmem>>, vector<1x64x64xbf16>
    %129 = vector.shape_cast %128 : vector<1x64x64xbf16> to vector<64x64xbf16>
    %c9_116 = arith.constant 9 : index
    %c0_117 = arith.constant 0 : index
    %c0_118 = arith.constant 0 : index
    %130 = vector.load %arg8[%c9_116, %c0_117, %c0_118] : memref<16x64x64xbf16, #tpu.memory_space<vmem>>, vector<1x64x64xbf16>
    %131 = vector.shape_cast %130 : vector<1x64x64xbf16> to vector<64x64xbf16>
    %c4_119 = arith.constant 4 : index
    %c0_120 = arith.constant 0 : index
    %132 = vector.load %arg9[%c4_119, %c0_120] : memref<8x64xf32, #tpu.memory_space<vmem>>, vector<1x64xf32>
    %c4_121 = arith.constant 4 : index
    %c0_122 = arith.constant 0 : index
    %133 = vector.load %arg13[%c4_121, %c0_122] : memref<32x64xf32, #tpu.memory_space<vmem>>, vector<16x64xf32>
    %134 = arith.truncf %133 : vector<16x64xf32> to vector<16x64xbf16>
    %cst_123 = arith.constant dense<0.000000e+00> : vector<16x64xf32>
    %135 = tpu.matmul %134, %129, %cst_123 {dimension_numbers = #tpu.dot_dimension_numbers<[1], [0], [0], [1], [0, 0, 1, 1], [], []>} : vector<16x64xbf16>, vector<64x64xbf16>, vector<16x64xf32> -> vector<16x64xf32>
    %c8_124 = arith.constant 8 : index
    %c0_125 = arith.constant 0 : index
    %136 = vector.load %arg13[%c8_124, %c0_125] : memref<32x64xf32, #tpu.memory_space<vmem>>, vector<16x64xf32>
    %137 = arith.truncf %136 : vector<16x64xf32> to vector<16x64xbf16>
    %cst_126 = arith.constant dense<0.000000e+00> : vector<16x64xf32>
    %138 = tpu.matmul %137, %131, %cst_126 {dimension_numbers = #tpu.dot_dimension_numbers<[1], [0], [0], [1], [0, 0, 1, 1], [], []>} : vector<16x64xbf16>, vector<64x64xbf16>, vector<16x64xf32> -> vector<16x64xf32>
    %139 = arith.addf %135, %138 : vector<16x64xf32>
    %140 = vector.broadcast %132 : vector<1x64xf32> to vector<16x64xf32>
    %141 = arith.addf %139, %140 : vector<16x64xf32>
    %cst_127 = arith.constant 0.000000e+00 : f32
    %142 = vector.broadcast %cst_127 : f32 to vector<16x64xf32>
    %143 = arith.maximumf %141, %142 : vector<16x64xf32>
    %c8_128 = arith.constant 8 : index
    %c0_129 = arith.constant 0 : index
    %144 = vector.load %arg13[%c8_128, %c0_129] : memref<32x64xf32, #tpu.memory_space<vmem>>, vector<16x64xf32>
    tpu.vector_store %arg13[%c8_128, %c0_129], %143 {strides = array<i32>} : memref<32x64xf32, #tpu.memory_space<vmem>>, vector<16x64xf32>,
    %c10 = arith.constant 10 : index
    %c0_130 = arith.constant 0 : index
    %c0_131 = arith.constant 0 : index
    %145 = vector.load %arg8[%c10, %c0_130, %c0_131] : memref<16x64x64xbf16, #tpu.memory_space<vmem>>, vector<1x64x64xbf16>
    %146 = vector.shape_cast %145 : vector<1x64x64xbf16> to vector<64x64xbf16>
    %c11 = arith.constant 11 : index
    %c0_132 = arith.constant 0 : index
    %c0_133 = arith.constant 0 : index
    %147 = vector.load %arg8[%c11, %c0_132, %c0_133] : memref<16x64x64xbf16, #tpu.memory_space<vmem>>, vector<1x64x64xbf16>
    %148 = vector.shape_cast %147 : vector<1x64x64xbf16> to vector<64x64xbf16>
    %c5_134 = arith.constant 5 : index
    %c0_135 = arith.constant 0 : index
    %149 = vector.load %arg9[%c5_134, %c0_135] : memref<8x64xf32, #tpu.memory_space<vmem>>, vector<1x64xf32>
    %c4_136 = arith.constant 4 : index
    %c0_137 = arith.constant 0 : index
    %150 = vector.load %arg13[%c4_136, %c0_137] : memref<32x64xf32, #tpu.memory_space<vmem>>, vector<16x64xf32>
    %151 = arith.truncf %150 : vector<16x64xf32> to vector<16x64xbf16>
    %cst_138 = arith.constant dense<0.000000e+00> : vector<16x64xf32>
    %152 = tpu.matmul %151, %146, %cst_138 {dimension_numbers = #tpu.dot_dimension_numbers<[1], [0], [0], [1], [0, 0, 1, 1], [], []>} : vector<16x64xbf16>, vector<64x64xbf16>, vector<16x64xf32> -> vector<16x64xf32>
    %c8_139 = arith.constant 8 : index
    %c0_140 = arith.constant 0 : index
    %153 = vector.load %arg13[%c8_139, %c0_140] : memref<32x64xf32, #tpu.memory_space<vmem>>, vector<16x64xf32>
    %154 = arith.truncf %153 : vector<16x64xf32> to vector<16x64xbf16>
    %cst_141 = arith.constant dense<0.000000e+00> : vector<16x64xf32>
    %155 = tpu.matmul %154, %148, %cst_141 {dimension_numbers = #tpu.dot_dimension_numbers<[1], [0], [0], [1], [0, 0, 1, 1], [], []>} : vector<16x64xbf16>, vector<64x64xbf16>, vector<16x64xf32> -> vector<16x64xf32>
    %156 = arith.addf %152, %155 : vector<16x64xf32>
    %157 = vector.broadcast %149 : vector<1x64xf32> to vector<16x64xf32>
    %158 = arith.addf %156, %157 : vector<16x64xf32>
    %cst_142 = arith.constant 0.000000e+00 : f32
    %159 = vector.broadcast %cst_142 : f32 to vector<16x64xf32>
    %160 = arith.maximumf %158, %159 : vector<16x64xf32>
    %161 = arith.addf %160, %126 : vector<16x64xf32>
    %cst_143 = arith.constant 0.000000e+00 : f32
    %162 = vector.broadcast %cst_143 : f32 to vector<16x64xf32>
    %163 = arith.maximumf %161, %162 : vector<16x64xf32>
    %c8_144 = arith.constant 8 : index
    %c0_145 = arith.constant 0 : index
    %164 = vector.load %arg13[%c8_144, %c0_145] : memref<32x64xf32, #tpu.memory_space<vmem>>, vector<16x64xf32>
    tpu.vector_store %arg13[%c8_144, %c0_145], %163 {strides = array<i32>} : memref<32x64xf32, #tpu.memory_space<vmem>>, vector<16x64xf32>,
    %c12 = arith.constant 12 : index
    %c0_146 = arith.constant 0 : index
    %c0_147 = arith.constant 0 : index
    %165 = vector.load %arg8[%c12, %c0_146, %c0_147] : memref<16x64x64xbf16, #tpu.memory_space<vmem>>, vector<1x64x64xbf16>
    %166 = vector.shape_cast %165 : vector<1x64x64xbf16> to vector<64x64xbf16>
    %c13 = arith.constant 13 : index
    %c0_148 = arith.constant 0 : index
    %c0_149 = arith.constant 0 : index
    %167 = vector.load %arg8[%c13, %c0_148, %c0_149] : memref<16x64x64xbf16, #tpu.memory_space<vmem>>, vector<1x64x64xbf16>
    %168 = vector.shape_cast %167 : vector<1x64x64xbf16> to vector<64x64xbf16>
    %c6_150 = arith.constant 6 : index
    %c0_151 = arith.constant 0 : index
    %169 = vector.load %arg9[%c6_150, %c0_151] : memref<8x64xf32, #tpu.memory_space<vmem>>, vector<1x64xf32>
    %c0_152 = arith.constant 0 : index
    %c0_153 = arith.constant 0 : index
    %170 = vector.load %arg13[%c0_152, %c0_153] : memref<32x64xf32, #tpu.memory_space<vmem>>, vector<16x64xf32>
    %171 = arith.truncf %170 : vector<16x64xf32> to vector<16x64xbf16>
    %cst_154 = arith.constant dense<0.000000e+00> : vector<16x64xf32>
    %172 = tpu.matmul %171, %166, %cst_154 {dimension_numbers = #tpu.dot_dimension_numbers<[1], [0], [0], [1], [0, 0, 1, 1], [], []>} : vector<16x64xbf16>, vector<64x64xbf16>, vector<16x64xf32> -> vector<16x64xf32>
    %c8_155 = arith.constant 8 : index
    %c0_156 = arith.constant 0 : index
    %173 = vector.load %arg13[%c8_155, %c0_156] : memref<32x64xf32, #tpu.memory_space<vmem>>, vector<16x64xf32>
    %174 = arith.truncf %173 : vector<16x64xf32> to vector<16x64xbf16>
    %cst_157 = arith.constant dense<0.000000e+00> : vector<16x64xf32>
    %175 = tpu.matmul %174, %168, %cst_157 {dimension_numbers = #tpu.dot_dimension_numbers<[1], [0], [0], [1], [0, 0, 1, 1], [], []>} : vector<16x64xbf16>, vector<64x64xbf16>, vector<16x64xf32> -> vector<16x64xf32>
    %176 = arith.addf %172, %175 : vector<16x64xf32>
    %177 = vector.broadcast %169 : vector<1x64xf32> to vector<16x64xf32>
    %178 = arith.addf %176, %177 : vector<16x64xf32>
    %cst_158 = arith.constant 0.000000e+00 : f32
    %179 = vector.broadcast %cst_158 : f32 to vector<16x64xf32>
    %180 = arith.maximumf %178, %179 : vector<16x64xf32>
    %c8_159 = arith.constant 8 : index
    %c0_160 = arith.constant 0 : index
    %181 = vector.load %arg13[%c8_159, %c0_160] : memref<32x64xf32, #tpu.memory_space<vmem>>, vector<16x64xf32>
    tpu.vector_store %arg13[%c8_159, %c0_160], %180 {strides = array<i32>} : memref<32x64xf32, #tpu.memory_space<vmem>>, vector<16x64xf32>,
    %c14 = arith.constant 14 : index
    %c0_161 = arith.constant 0 : index
    %c0_162 = arith.constant 0 : index
    %182 = vector.load %arg8[%c14, %c0_161, %c0_162] : memref<16x64x64xbf16, #tpu.memory_space<vmem>>, vector<1x64x64xbf16>
    %183 = vector.shape_cast %182 : vector<1x64x64xbf16> to vector<64x64xbf16>
    %c15 = arith.constant 15 : index
    %c0_163 = arith.constant 0 : index
    %c0_164 = arith.constant 0 : index
    %184 = vector.load %arg8[%c15, %c0_163, %c0_164] : memref<16x64x64xbf16, #tpu.memory_space<vmem>>, vector<1x64x64xbf16>
    %185 = vector.shape_cast %184 : vector<1x64x64xbf16> to vector<64x64xbf16>
    %c7_165 = arith.constant 7 : index
    %c0_166 = arith.constant 0 : index
    %186 = vector.load %arg9[%c7_165, %c0_166] : memref<8x64xf32, #tpu.memory_space<vmem>>, vector<1x64xf32>
    %c0_167 = arith.constant 0 : index
    %c0_168 = arith.constant 0 : index
    %187 = vector.load %arg13[%c0_167, %c0_168] : memref<32x64xf32, #tpu.memory_space<vmem>>, vector<16x64xf32>
    %188 = arith.truncf %187 : vector<16x64xf32> to vector<16x64xbf16>
    %cst_169 = arith.constant dense<0.000000e+00> : vector<16x64xf32>
    %189 = tpu.matmul %188, %183, %cst_169 {dimension_numbers = #tpu.dot_dimension_numbers<[1], [0], [0], [1], [0, 0, 1, 1], [], []>} : vector<16x64xbf16>, vector<64x64xbf16>, vector<16x64xf32> -> vector<16x64xf32>
    %c8_170 = arith.constant 8 : index
    %c0_171 = arith.constant 0 : index
    %190 = vector.load %arg13[%c8_170, %c0_171] : memref<32x64xf32, #tpu.memory_space<vmem>>, vector<16x64xf32>
    %191 = arith.truncf %190 : vector<16x64xf32> to vector<16x64xbf16>
    %cst_172 = arith.constant dense<0.000000e+00> : vector<16x64xf32>
    %192 = tpu.matmul %191, %185, %cst_172 {dimension_numbers = #tpu.dot_dimension_numbers<[1], [0], [0], [1], [0, 0, 1, 1], [], []>} : vector<16x64xbf16>, vector<64x64xbf16>, vector<16x64xf32> -> vector<16x64xf32>
    %193 = arith.addf %189, %192 : vector<16x64xf32>
    %194 = vector.broadcast %186 : vector<1x64xf32> to vector<16x64xf32>
    %195 = arith.addf %193, %194 : vector<16x64xf32>
    %cst_173 = arith.constant 0.000000e+00 : f32
    %196 = vector.broadcast %cst_173 : f32 to vector<16x64xf32>
    %197 = arith.maximumf %195, %196 : vector<16x64xf32>
    %198 = arith.addf %197, %163 : vector<16x64xf32>
    %cst_174 = arith.constant 0.000000e+00 : f32
    %199 = vector.broadcast %cst_174 : f32 to vector<16x64xf32>
    %200 = arith.maximumf %198, %199 : vector<16x64xf32>
    %c8_175 = arith.constant 8 : index
    %c0_176 = arith.constant 0 : index
    %201 = vector.load %arg13[%c8_175, %c0_176] : memref<32x64xf32, #tpu.memory_space<vmem>>, vector<16x64xf32>
    tpu.vector_store %arg13[%c8_175, %c0_176], %200 {strides = array<i32>} : memref<32x64xf32, #tpu.memory_space<vmem>>, vector<16x64xf32>,
    %c23 = arith.constant 23 : index
    %c0_177 = arith.constant 0 : index
    %202 = vector.load %arg13[%c23, %c0_177] : memref<32x64xf32, #tpu.memory_space<vmem>>, vector<1x64xf32>
    %c0_178 = arith.constant 0 : index
    %c0_179 = arith.constant 0 : index
    %203 = vector.load %arg10[%c0_178, %c0_179] : memref<64x9xbf16, #tpu.memory_space<vmem>>, vector<64x9xbf16>
    %204 = arith.truncf %202 : vector<1x64xf32> to vector<1x64xbf16>
    %cst_180 = arith.constant dense<0.000000e+00> : vector<1x9xf32>
    %205 = tpu.matmul %204, %203, %cst_180 {dimension_numbers = #tpu.dot_dimension_numbers<[1], [0], [0], [1], [0, 0, 1, 1], [], []>} : vector<1x64xbf16>, vector<64x9xbf16>, vector<1x9xf32> -> vector<1x9xf32>
    %c0_181 = arith.constant 0 : index
    %c0_182 = arith.constant 0 : index
    %206 = vector.load %arg11[%c0_181, %c0_182] : memref<1x9xf32, #tpu.memory_space<vmem>>, vector<1x9xf32>
    %207 = arith.addf %205, %206 : vector<1x9xf32>
    %c0_183 = arith.constant 0 : index
    %c0_184 = arith.constant 0 : index
    %c0_185 = arith.constant 0 : index
    %208 = vector.load %arg12[%c0_183, %c0_184, %c0_185] : memref<1x1x9xf32, #tpu.memory_space<vmem>>, vector<1x1x9xf32>
    %209 = vector.shape_cast %208 : vector<1x1x9xf32> to vector<1x9xf32>
    %210 = vector.shape_cast %207 : vector<1x9xf32> to vector<1x1x9xf32>
    tpu.vector_store %arg12[%c0_183, %c0_184, %c0_185], %210 {strides = array<i32>} : memref<1x1x9xf32, #tpu.memory_space<vmem>>, vector<1x1x9xf32>,
    return
  }
  func.func @transform_0(%arg0: i32) -> (i32, i32, i32) {
    %c0_i32 = arith.constant 0 : i32
    %c0_i32_0 = arith.constant 0 : i32
    %c0_i32_1 = arith.constant 0 : i32
    return %arg0, %c0_i32, %c0_i32_0 : i32, i32, i32
  }
  func.func @transform_1(%arg0: i32) -> (i32, i32) {
    %c0_i32 = arith.constant 0 : i32
    %c0_i32_0 = arith.constant 0 : i32
    %c0_i32_1 = arith.constant 0 : i32
    return %c0_i32, %c0_i32_0 : i32, i32
  }
  func.func @transform_2(%arg0: i32) -> (i32, i32) {
    %c0_i32 = arith.constant 0 : i32
    %c0_i32_0 = arith.constant 0 : i32
    %c0_i32_1 = arith.constant 0 : i32
    return %c0_i32, %c0_i32_0 : i32, i32
  }
  func.func @transform_3(%arg0: i32) -> (i32, i32) {
    %c0_i32 = arith.constant 0 : i32
    %c0_i32_0 = arith.constant 0 : i32
    %c0_i32_1 = arith.constant 0 : i32
    return %c0_i32, %c0_i32_0 : i32, i32
  }
  func.func @transform_4(%arg0: i32) -> (i32, i32) {
    %c0_i32 = arith.constant 0 : i32
    %c0_i32_0 = arith.constant 0 : i32
    %c0_i32_1 = arith.constant 0 : i32
    return %c0_i32, %c0_i32_0 : i32, i32
  }
  func.func @transform_5(%arg0: i32) -> (i32, i32, i32) {
    %c0_i32 = arith.constant 0 : i32
    %c0_i32_0 = arith.constant 0 : i32
    %c0_i32_1 = arith.constant 0 : i32
    %c0_i32_2 = arith.constant 0 : i32
    return %c0_i32, %c0_i32_0, %c0_i32_1 : i32, i32, i32
  }
  func.func @transform_6(%arg0: i32) -> (i32, i32) {
    %c0_i32 = arith.constant 0 : i32
    %c0_i32_0 = arith.constant 0 : i32
    %c0_i32_1 = arith.constant 0 : i32
    return %c0_i32, %c0_i32_0 : i32, i32
  }
  func.func @transform_7(%arg0: i32) -> (i32, i32, i32) {
    %c0_i32 = arith.constant 0 : i32
    %c0_i32_0 = arith.constant 0 : i32
    %c0_i32_1 = arith.constant 0 : i32
    %c0_i32_2 = arith.constant 0 : i32
    return %c0_i32, %c0_i32_0, %c0_i32_1 : i32, i32, i32
  }
  func.func @transform_8(%arg0: i32) -> (i32, i32) {
    %c0_i32 = arith.constant 0 : i32
    %c0_i32_0 = arith.constant 0 : i32
    %c0_i32_1 = arith.constant 0 : i32
    return %c0_i32, %c0_i32_0 : i32, i32
  }
  func.func @transform_9(%arg0: i32) -> (i32, i32) {
    %c0_i32 = arith.constant 0 : i32
    %c0_i32_0 = arith.constant 0 : i32
    %c0_i32_1 = arith.constant 0 : i32
    return %c0_i32, %c0_i32_0 : i32, i32
  }
  func.func @transform_10(%arg0: i32) -> (i32, i32) {
    %c0_i32 = arith.constant 0 : i32
    %c0_i32_0 = arith.constant 0 : i32
    %c0_i32_1 = arith.constant 0 : i32
    return %c0_i32, %c0_i32_0 : i32, i32
  }
  func.func @transform_11(%arg0: i32) -> (i32, i32, i32) {
    %c0_i32 = arith.constant 0 : i32
    %c0_i32_0 = arith.constant 0 : i32
    %c0_i32_1 = arith.constant 0 : i32
    return %arg0, %c0_i32, %c0_i32_0 : i32, i32, i32
  }
}

</mosaic_0001>

<bundles_post_ra>
// kernel: conv1dtcn_forward.1
= control target key start
LH: loop header
LB: loop body
LE: loop exit
PB: predicated region body
PF: predicated region fallthrough
CT: control target
= control target key end

     0   :  { %16 = vsyncpa [#allocation4], 0  ;;  %s6772_s0 = inlined_call_operand.vmem [shape: f32[2,17,896], index: 0, kind: input, shape index: {}]   ;;  %s6773_s1 = inlined_call_operand.hbm [shape: bf16[896,64], index: 1, kind: input, shape index: {}]   ;;  %s6774_s2 = inlined_call_operand.hbm [shape: bf16[896,64], index: 2, kind: input, shape index: {}]   ;;  %s6775_s3 = inlined_call_operand.vmem [shape: bf16[896,64], index: 3, kind: input, shape index: {}]   ;;  %s6776_s4 = inlined_call_operand.vmem [shape: f32[1,64], index: 4, kind: input, shape index: {}]   ;;  %s6777_s5 = inlined_call_operand.vmem [shape: bf16[3,64,64], index: 5, kind: input, shape index: {}]   ;;  %s6778_s6 = inlined_call_operand.vmem [shape: f32[1,64], index: 6, kind: input, shape index: {}]   ;;  %s6779_s7 = inlined_call_operand.vmem [shape: bf16[16,64,64], index: 7, kind: input, shape index: {}]   ;;  %s6780_s8 = inlined_call_operand.vmem [shape: f32[8,64], index: 8, kind: input, shape index: {}]   ;;  %s6781_s9 = inlined_call_operand.vmem [shape: bf16[64,9], index: 9, kind: input, shape index: {}]   ;;  %s6782_s10 = inlined_call_operand.vmem [shape: f32[1,9], index: 10, kind: input, shape index: {}]   ;;  %s6783_s11 = inlined_call_operand.hbm [shape: f32[2,1,9], index: 11, kind: output, shape index: {}]  }
   0x1   :  { %17 = vsyncpa [#allocation7], 0 }
   0x2   :  { %18 = vsyncpa [#allocation5], 0 }
   0x3   :  { %20 = vsyncpa [#allocation5 + $0x1], 0  ;;  %s5800_s17 = smov 0   ;;  %s5802_s18 = smov 0  }
   0x4   :  { %s5804_s19 = smov 0   ;;  %s5806_s20 = smov 0  }
   0x5 LB: > { %6792 = sst [smem:[#allocation12_spill]] %s5719_s17  ;;  %s5821_s21 = sadd.s32 4294967295, %s5731_s20   ;;  %s5731_s20 = sphi %s5806_s20, %s6810_s20   ;;  %s5727_s19 = sphi %s5804_s19, %s6812_s19   ;;  %s5723_s18 = sphi %s5802_s18, %s6814_s18   ;;  %s5719_s17 = sphi %s5800_s17, %s6813_s17  }
   0x6   : > { %6793 = sst [smem:[#allocation13_spill]] %s5727_s19  ;;  %s4231_s22 = sadd.s32 4294967294, %s5731_s20  }
   0x7   : > { %s5825_s23 = sadd.s32 1, %s5731_s20   ;;  %s269_s24 = sadd.s32 1, %s5727_s19 }
   0x8   : > { %6794 = sst [smem:[#allocation14_spill]] %s5825_s23  ;;  %s266_s25 = ssub.s32 %s5731_s20, %s5825_s23 }
   0x9   : > { %p279_p0 = scmp.ne.s32.totalorder %s5727_s19, %s5723_s18  ;;  %p267_p1 = scmp.eq.s32.totalorder %s266_s25, 0 }
   0xa   : > { %p280_p2 = scmp.eq.s32.totalorder %s5821_s21, 1  ;;  %p285_p3 = scmp.ne.s32.totalorder %s5723_s18, %s5719_s17 }
   0xb   : > { %p286_p4 = scmp.eq.s32.totalorder %s4231_s22, 1  ;;  %p4232_p7 = scmp.ge.s32.totalorder %s5731_s20, 1 }
   0xc   : > { %s5836_s26 = scalar_select %p267_p1, %s5727_s19, %s269_s24  }
   0xd   : > { %p5838_p5 = por %p280_p2, %p279_p0  ;;  %p5842_p6 = por %p286_p4, %p285_p3 }
   0xe   : > { %6795 = sst [smem:[#allocation15_spill]] %s5836_s26  ;;  %p293_p8 = scmp.lt.s32.totalorder %s5731_s20, 3 }
   0xf   : > { %s6796_s27 = scalar_select %p5838_p5, 1, 0 }
  0x10   : > { %s6797_s28 = scalar_select %p5842_p6, 1, 0 }
  0x11   : > { %p6785_p9 = scmp.eq.s32.totalorder %s5821_s21, 0  ;;  %p5849_p10 = pnand %p4232_p7, %p293_p8 }
  0x12   : > { %6798 = sst [smem:[#allocation16_spill]] %s6797_s28  ;;  %s5733_s30 = smov [#allocation3]  }
  0x13   : > { %s6799_s29 = scalar_select %p5849_p10, 1, 0 }
  0x14   : > { %s305_s12 = sshll.u32 %s5733_s30, 4  ;;  %p5303_p11 = pneg %p5849_p10  ;;  %s306_s12 = int_to_ptr.vmem [resolvable:$true] %s305_s12 }
  0x15   : > { %s5734_s14 = smov [#allocation6]   ;;  %s5605_s24 = scalar_lea.hbm %s6773_s1, 7168 }
  0x16   : > { %p5857_p12 = pnand %p6785_p9, %p5303_p11  ;;  %s318_s15 = sshll.u32 %s5734_s14, 4  ;;  %s5861_s15 = int_to_ptr.vmem [resolvable:$true] %s318_s15 }
  0x17   : > { %p5606_p13 = scmp.ne.s32.totalorder %s6773_s1, %s5605_s24  ;;  %p5612_p3 = scmp.lt.u32.totalorder %s5605_s24, %s6773_s1 }
  0x18   : > { %p5607_p0 = pneg %p5857_p12 }
  0x1a   : > { %p5608_p1 = pnand %p5607_p0, %p5606_p13 }
  0x1c   : > { %p5609_p2 = pneg %p5608_p1 }
  0x1e   : > { %p5614_p4 = pnand %p5612_p3, %p5609_p2 }
  0x20   : > { %5617 = shalt.err (!%p5614_p4)
}
  0x21   : > { %s5618_s14 = scalar_lea.vmem %s306_s12, 7168  ;;  %p5626_p9 = scmp.lt.s32.totalorder %s306_s12, %s306_s12 }
  0x22   : > { %p5619_p7 = scmp.ne.s32.totalorder %s306_s12, %s5618_s14  ;;  %p5627_p6 = scmp.lt.s32.totalorder %s5618_s14, %s5618_s14 }
  0x24   : > { %p5621_p8 = pnand %p5619_p7, %p5607_p0  ;;  %p5628_p5 = por %p5627_p6, %p5626_p9 }
  0x26   : > { %p5622_p11 = pneg %p5621_p8 }
  0x28   : > { %p5629_p10 = pnand %p5628_p5, %p5622_p11 }
  0x2a   : > { %5632 = shalt.err (!%p5629_p10)
}
  0x2b   : > { %s5735_s16 = smov 64   ;;  %s5736_s22 = smov 4  }
  0x2c   : > { %5306 = dma.hbm_to_vmem [thread:$0]  (!%p5857_p12), %s6773_s1, 7168, %s306_s12, [#allocation4], %s5735_s16, %s5735_s16, %s5736_s22  }
  0x2d   : > { %s5633_s30 = scalar_lea.hbm %s6774_s2, 7168 }
  0x2e   : > { %p5634_p13 = scmp.ne.s32.totalorder %s6774_s2, %s5633_s30  ;;  %p5640_p9 = scmp.lt.u32.totalorder %s5633_s30, %s6774_s2 }
  0x30   : > { %p5636_p5 = pnand %p5634_p13, %p5607_p0 }
  0x32   : > { %p5637_p6 = pneg %p5636_p5 }
  0x34   : > { %p5642_p10 = pnand %p5640_p9, %p5637_p6 }
  0x36   : > { %5645 = shalt.err (!%p5642_p10)
}
  0x37   : > { %s5646_s12 = scalar_lea.vmem %s5861_s15, 7168  ;;  %p5654_p4 = scmp.lt.s32.totalorder %s5861_s15, %s5861_s15 }
  0x38   : > { %p5647_p1 = scmp.ne.s32.totalorder %s5861_s15, %s5646_s12  ;;  %p5655_p7 = scmp.lt.s32.totalorder %s5646_s12, %s5646_s12 }
  0x3a   : > { %p5649_p2 = pnand %p5647_p1, %p5607_p0  ;;  %p5656_p8 = por %p5655_p7, %p5654_p4 }
  0x3c   : > { %p5650_p3 = pneg %p5649_p2 }
  0x3e   : > { %p5657_p11 = pnand %p5656_p8, %p5650_p3 }
  0x40   : > { %5660 = shalt.err (!%p5657_p11)
}
  0x41   : > { %5309 = dma.hbm_to_vmem [thread:$0]  (!%p5857_p12), %s6774_s2, 7168, %s5861_s15, [#allocation7], %s5735_s16, %s5735_s16, %s5736_s22  }
  0x42   : > { %p6801_p13 = scmp.ne.s32.totalorder %s6799_s29, 0 }
  0x43   : > { %p6802_p5 = scmp.eq.s32.totalorder (!%p6801_p13), %s5821_s21, 0 }
  0x44   : > { %366 = sbr.rel (%p6801_p13) target bundleno = 2889 (0xb49), region = 64 }
  0x4b   : > { %5706 = dma.done.wait (%p6802_p5), [#allocation4], 7168   ;;  %p6803_p0 = pmov %p6802_p5 }
  0x4d   : > { %5708 = vsyncadd (%p6803_p0), [#allocation4], 4294960128  ;;  %p6804_p6 = pmov %p6803_p0 }
  0x4e   : > { %p6805_p9 = pmov %p6803_p0 }
  0x4f   : > { %5710 = dma.done.wait (%p6804_p6), [#allocation7], 7168  }
  0x50   : > { %5712 = vsyncadd (%p6805_p9), [#allocation7], 4294960128  ;;  %v5357_v0 = vld [vmem:[#allocation3 + $0x40] sm:$0xff]   ;;  %v5361_v4 = vld [vmem:[#allocation3 + $0x48] sm:$0xff]   ;;  %p409_p12 = scmp.lt.s32.totalorder %s5821_s21, 1  ;;  %v5737_v40 = vmov 0.0  }
  0x51   : > { %v5358_v1 = vld [vmem:[#allocation3 + $0xc0] sm:$0xff]   ;;  %4657 = vmatprep.subr.bf16.mxu0 %v5357_v0  ;;  %v5362_v5 = vld [vmem:[#allocation3 + $0xc8] sm:$0xff]   ;;  %v5365_v8 = vld [vmem:[#allocation3 + $0x50] sm:$0xff]   ;;  %vm5738_vm0 = vmmov 0   ;;  %vm1312_vm1 = vsmask.f32 7424 }
  0x52   : > { %v5359_v2 = vld [vmem:[#allocation3] sm:$0xff]   ;;  %4679 = vmatprep.subr.bf16.mxu1 %v5358_v1  ;;  %v5363_v6 = vld [vmem:[#allocation3 + $0x8] sm:$0xff]   ;;  %v5366_v9 = vld [vmem:[#allocation3 + $0xd0] sm:$0xff]   ;;  %s410_s28 = scalar_select %p409_p12, %s5821_s21, 1  ;;  %vm415_vm2 = vcmask 523264   ;;  %vm4139_vm3 = vcmask 65536  }
  0x53   : > { %v5360_v3 = vld [vmem:[#allocation3 + $0x80] sm:$0xff]   ;;  %4658 = vmatpush3.bf16.msra.mxu0 %v5359_v2  ;;  %v5364_v7 = vld [vmem:[#allocation3 + $0x88] sm:$0xff]   ;;  %v5367_v10 = vld [vmem:[#allocation3 + $0x10] sm:$0xff]   ;;  %417 = vst.msk [vmem:[#allocation2 + $0x8] sm:$0xff] %vm415_vm2, %v5737_v40  ;;  %s4654_s26 = sshll.u32 %s5821_s21, 4  ;;  %p6806_p1 = scmp.ne.s32.totalorder %s6796_s27, 0 }
  0x54   : > { %4680 = vmatpush3.bf16.msra.mxu1 %v5360_v3  ;;  %4659 = vmatprep.subr.bf16.mxu0 %v5361_v4  ;;  %v5368_v11 = vld [vmem:[#allocation3 + $0x90] sm:$0xff]   ;;  %v5369_v12 = vld [vmem:[#allocation3 + $0x58] sm:$0xff]   ;;  %v5373_v16 = vld [vmem:[#allocation3 + $0x60] sm:$0xff]   ;;  %s5292_s29 = smul.u32 168, %s410_s28  ;;  %416 = vst.msk [vmem:[#allocation2] sm:$0xff] %vm415_vm2, %v5737_v40  ;;  %s6730_s12 = scalar_lea.hbm %s6783_s11, %s4654_s26 }
  0x55   : > { %4681 = vmatprep.subr.bf16.mxu1 %v5362_v5  ;;  %v5370_v13 = vld [vmem:[#allocation3 + $0xd8] sm:$0xff]   ;;  %v5374_v17 = vld [vmem:[#allocation3 + $0xe0] sm:$0xff]   ;;  %v5377_v20 = vld [vmem:[#allocation3 + $0x68] sm:$0xff]   ;;  %418 = vst.msk [vmem:[#allocation2 + $0x10] sm:$0xff] %vm415_vm2, %v5737_v40  ;;  %s5739_s23 = smov [#allocation8]  }
  0x56   : > { %v5371_v14 = vld [vmem:[#allocation3 + $0x18] sm:$0xff]   ;;  %v5375_v18 = vld [vmem:[#allocation3 + $0x20] sm:$0xff]   ;;  %v5378_v21 = vld [vmem:[#allocation3 + $0xe8] sm:$0xff]   ;;  %s5925_s16 = scalar_lea.vmem %s6772_s0, %s5292_s29  ;;  %419 = vst.msk [vmem:[#allocation2 + $0x18] sm:$0xff] %vm415_vm2, %v5737_v40  ;;  %s5665_s28 = sshll.u32 %s5739_s23, 4  ;;  %s5666_s28 = int_to_ptr.vmem [resolvable:$false] %s5665_s28 }
  0x57   : > { %4660 = vmatpush3.bf16.msra.mxu0 %v5363_v6  ;;  %v5372_v15 = vld [vmem:[#allocation3 + $0x98] sm:$0xff]   ;;  %v5376_v19 = vld [vmem:[#allocation3 + $0xa0] sm:$0xff]   ;;  %v5379_v22 = vld [vmem:[#allocation3 + $0x28] sm:$0xff]   ;;  %s5667_s29 = scalar_lea.vmem %s5666_s28, 32 }
  0x58   : > { %4682 = vmatpush3.bf16.msra.mxu1 %v5364_v7  ;;  %4661 = vmatprep.subr.bf16.mxu0 %v5365_v8  ;;  %v5380_v23 = vld [vmem:[#allocation3 + $0xa8] sm:$0xff]   ;;  %v5381_v24 = vld [vmem:[#allocation3 + $0x70] sm:$0xff]   ;;  %v5385_v28 = vld [vmem:[#allocation3 + $0x78] sm:$0xff]  }
  0x59   : > { %4683 = vmatprep.subr.bf16.mxu1 %v5366_v9  ;;  %v5382_v25 = vld [vmem:[#allocation3 + $0xf0] sm:$0xff]   ;;  %v5386_v29 = vld [vmem:[#allocation3 + $0xf8] sm:$0xff]   ;;  %v421_v32 = vld [vmem:[%s5925_s16 + $0x8] sm:$0xff] }
  0x5a   : > { %v5383_v26 = vld [vmem:[#allocation3 + $0x30] sm:$0xff]   ;;  %v5387_v30 = vld [vmem:[#allocation3 + $0x38] sm:$0xff]   ;;  %v5929_v33 = vld [vmem:[%s5925_s16 + $0x40] sm:$0xff] }
  0x5b   : > { %4662 = vmatpush3.bf16.msra.mxu0 %v5367_v10  ;;  %v5384_v27 = vld [vmem:[#allocation3 + $0xb0] sm:$0xff]   ;;  %v5388_v31 = vld [vmem:[#allocation3 + $0xb8] sm:$0xff]   ;;  %v5932_v34 = vpack.c.bf16 %v5929_v33, %v421_v32  ;;  %v420_v35 = vld [vmem:[%s5925_s16] sm:$0xff] }
  0x5c   : > { %4684 = vmatpush3.bf16.msra.mxu1 %v5368_v11  ;;  %4663 = vmatprep.subr.bf16.mxu0 %v5369_v12  ;;  %v5936_v36 = vld [vmem:[%s5925_s16 + $0x38] sm:$0xff]  ;;  %v5943_v39 = vld [vmem:[%s5925_s16 + $0x50] sm:$0xff]  ;;  %v5389_v42 = vld [vmem:[#allocation3 + $0x140] sm:$0xff]  }
  0x5d   : > { %4685 = vmatprep.subr.bf16.mxu1 %v5370_v13  ;;  %v5939_v37 = vpack.c.bf16 %v5936_v36, %v420_v35  ;;  %v423_v38 = vld [vmem:[%s5925_s16 + $0x18] sm:$0xff]  ;;  %942 = vmatprep.mubr.bf16.mxu0 %v5932_v34  ;;  %v422_v43 = vld [vmem:[%s5925_s16 + $0x10] sm:$0xff]  ;;  %v5953_v44 = vld [vmem:[%s5925_s16 + $0x48] sm:$0xff] }
  0x5e   : > { %v5948_v41 = vpack.c.bf16 %v5943_v39, %v423_v38  ;;  %v5957_v45 = vpack.c.bf16 %v5953_v44, %v422_v43  ;;  %v5390_v46 = vld [vmem:[#allocation3 + $0x100] sm:$0xff]   ;;  %v5392_v48 = vld [vmem:[#allocation3 + $0x148] sm:$0xff]   ;;  %v5395_v51 = vld [vmem:[#allocation3 + $0x150] sm:$0xff]  }
  0x5f   : > { %4664 = vmatpush3.bf16.msra.mxu0 %v5371_v14  ;;  %v5391_v47 = vld [vmem:[#allocation3 + $0x180] sm:$0xff]   ;;  %v5393_v49 = vld [vmem:[#allocation3 + $0x108] sm:$0xff]   ;;  %v5396_v52 = vld [vmem:[#allocation3 + $0x110] sm:$0xff]  }
  0x60   : > { %4686 = vmatpush3.bf16.msra.mxu1 %v5372_v15  ;;  %4665 = vmatprep.subr.bf16.mxu0 %v5373_v16  ;;  %v5394_v50 = vld [vmem:[#allocation3 + $0x188] sm:$0xff]   ;;  %v5397_v53 = vld [vmem:[#allocation3 + $0x190] sm:$0xff]   ;;  %v5398_v54 = vld [vmem:[#allocation3 + $0x158] sm:$0xff]  }
  0x61   : > { %4687 = vmatprep.subr.bf16.mxu1 %v5374_v17  ;;  %983 = vmatprep.mubr.bf16.mxu1 %v5948_v41  ;;  %v5399_v55 = vld [vmem:[#allocation3 + $0x118] sm:$0xff]   ;;  %v5401_v57 = vld [vmem:[#allocation3 + $0x160] sm:$0xff]   ;;  %v5404_v60 = vld [vmem:[#allocation3 + $0x168] sm:$0xff]  }
  0x62   : > { %v5400_v56 = vld [vmem:[#allocation3 + $0x198] sm:$0xff]   ;;  %v5402_v58 = vld [vmem:[#allocation3 + $0x120] sm:$0xff]   ;;  %v5405_v61 = vld [vmem:[#allocation3 + $0x128] sm:$0xff]  }
  0x63   : > { %4666 = vmatpush3.bf16.msra.mxu0 %v5375_v18  ;;  %v5403_v59 = vld [vmem:[#allocation3 + $0x1a0] sm:$0xff]   ;;  %v5406_v62 = vld [vmem:[#allocation3 + $0x1a8] sm:$0xff]   ;;  %v5407_v63 = vld [vmem:[#allocation3 + $0x170] sm:$0xff]  }
  0x64   : > { %4688 = vmatpush3.bf16.msra.mxu1 %v5376_v19  ;;  %4667 = vmatprep.subr.bf16.mxu0 %v5377_v20  ;;  %v5408_v0 = vld [vmem:[#allocation3 + $0x130] sm:$0xff]   ;;  %v5410_v2 = vld [vmem:[#allocation3 + $0x178] sm:$0xff]   ;;  %v425_v3 = vld [vmem:[%s5925_s16 + $0x28] sm:$0xff] }
  0x65   : > { %4689 = vmatprep.subr.bf16.mxu1 %v5378_v21  ;;  %v5409_v1 = vld [vmem:[#allocation3 + $0x1b0] sm:$0xff]   ;;  %v5970_v4 = vld [vmem:[%s5925_s16 + $0x60] sm:$0xff]  ;;  %v5411_v5 = vld [vmem:[#allocation3 + $0x138] sm:$0xff]  }
  0x66   : > { %v5412_v6 = vld [vmem:[#allocation3 + $0x1b8] sm:$0xff]   ;;  %v5973_v7 = vpack.c.bf16 %v5970_v4, %v425_v3  ;;  %v424_v8 = vld [vmem:[%s5925_s16 + $0x20] sm:$0xff]  ;;  %v426_v12 = vld [vmem:[%s5925_s16 + $0x30] sm:$0xff] }
  0x67   : > { %4668 = vmatpush3.bf16.msra.mxu0 %v5379_v22  ;;  %v5977_v9 = vld [vmem:[%s5925_s16 + $0x58] sm:$0xff]  ;;  %v5413_v10 = vld [vmem:[%s6775_s3 + $0x40] sm:$0xff]   ;;  %v5989_v13 = vld [vmem:[%s5925_s16 + $0x68] sm:$0xff] }
  0x68   : > { %4690 = vmatpush3.bf16.msra.mxu1 %v5380_v23  ;;  %4669 = vmatprep.subr.bf16.mxu0 %v5381_v24  ;;  %v5414_v11 = vld [vmem:[%s6775_s3 + $0xc0] sm:$0xff]   ;;  %v5992_v14 = vpack.c.bf16 %v5977_v9, %v424_v8  ;;  %v5995_v15 = vpack.c.bf16 %v5989_v13, %v426_v12  ;;  %v5417_v18 = vld [vmem:[%s6775_s3 + $0x48] sm:$0xff]   ;;  %v5421_v22 = vld [vmem:[%s6775_s3 + $0x50] sm:$0xff]  }
  0x69   : > { %4691 = vmatprep.subr.bf16.mxu1 %v5382_v25  ;;  %v5415_v16 = vld [vmem:[%s6775_s3] sm:$0xff]   ;;  %v5418_v19 = vld [vmem:[%s6775_s3 + $0xc8] sm:$0xff]   ;;  %v5422_v23 = vld [vmem:[%s6775_s3 + $0xd0] sm:$0xff]  }
  0x6a   : > { %v5416_v17 = vld [vmem:[%s6775_s3 + $0x80] sm:$0xff]   ;;  %v5419_v20 = vld [vmem:[%s6775_s3 + $0x8] sm:$0xff]   ;;  %v5423_v24 = vld [vmem:[%s6775_s3 + $0x10] sm:$0xff]  }
  0x6b   : > { %4670 = vmatpush3.bf16.msra.mxu0 %v5383_v26  ;;  %v5420_v21 = vld [vmem:[%s6775_s3 + $0x88] sm:$0xff]   ;;  %v5424_v26 = vld [vmem:[%s6775_s3 + $0x90] sm:$0xff]   ;;  %v437_v35 = vld [vmem:[%s5925_s16 + $0x18] sm:$0xfe] }
  0x6c   : > { %4692 = vmatpush3.bf16.msra.mxu1 %v5384_v27  ;;  %4671 = vmatprep.subr.bf16.mxu0 %v5385_v28  ;;  %v435_v25 = vld [vmem:[%s5925_s16 + $0x8] sm:$0xfe]  ;;  %v5425_v27 = vld [vmem:[%s6775_s3 + $0x58] sm:$0xff]   ;;  %v5429_v38 = vld [vmem:[%s6775_s3 + $0x60] sm:$0xff]  }
  0x6d   : > { %4693 = vmatprep.subr.bf16.mxu1 %v5386_v29  ;;  %v5426_v28 = vld [vmem:[%s6775_s3 + $0xd8] sm:$0xff]   ;;  %v434_v29 = vld [vmem:[%s5925_s16] sm:$0xfe]  ;;  %v6044_v32 = vpack.c.bf16 %v5929_v33, %v435_v25  ;;  %v436_v43 = vld [vmem:[%s5925_s16 + $0x10] sm:$0xfe] }
  0x6e   : > { %v5432_v33 = vld [vmem:[%s6775_s3 + $0xa0] sm:$0xff]   ;;  %v5444_v8 = vld [vmem:[%s6775_s3 + $0xb8] sm:$0xff]  }
  0x6f   : > { %4672 = vmatpush3.bf16.msra.mxu0 %v5387_v30  ;;  %v5427_v30 = vld [vmem:[%s6775_s3 + $0x18] sm:$0xff]  }
  0x70   : > { %4694 = vmatpush3.bf16.msra.mxu1 %v5388_v31  ;;  %4701 = vmatprep.subr.bf16.mxu0 %v5389_v42  ;;  %v5428_v31 = vld [vmem:[%s6775_s3 + $0x98] sm:$0xff]   ;;  %v5430_v42 = vld [vmem:[%s6775_s3 + $0xe0] sm:$0xff]  }
  0x71   : > { %4982 = vmatprep.subr.bf16.mxu1 %v5737_v40 }
  0x72   : > { %943 = vmatmul.mubr.bf16.vlgmr.msra.gmra.mrb[0].mxu0 %v5939_v37 }
  0x73   : > { %984 = vmatmul.mubr.bf16.vlgmr.msra.gmra.mrb[0].mxu1 %v5957_v45  ;;  %4702 = vmatpush3.bf16.msra.mxu0 %v5390_v46  ;;  %v5431_v46 = vld [vmem:[%s6775_s3 + $0x20] sm:$0xff]  }
  0x74   : > { %4983 = vmatpush3.bf16.msra.mxu1 %v5391_v47  ;;  %4998 = vmatprep.mubr.msk.bf16.mxu1 %vm5738_vm0, %v5737_v40  ;;  %v1298_v47 = vpack.c.bf16 %v5936_v36, %v434_v29  ;;  %v5434_v36 = vld [vmem:[%s6775_s3 + $0xe8] sm:$0xff]  }
  0x75   : > { %4703 = vmatprep.subr.bf16.mxu0 %v5392_v48  ;;  %4984 = vmatprep.subr.bf16.mxu1 %v5737_v40  ;;  %v1328_v48 = vshll.u32 %v6044_v32, 16 }
  0x76   : > { %1024 = vmatprep.mubr.bf16.mxu0 %v5973_v7 }
  0x77   : > { %4704 = vmatpush3.bf16.msra.mxu0 %v5393_v49  ;;  %v5433_v49 = vld [vmem:[%s6775_s3 + $0x68] sm:$0xff]  }
  0x78   : > { %4985 = vmatpush3.bf16.msra.mxu1 %v5394_v50  ;;  %4705 = vmatprep.subr.bf16.mxu0 %v5395_v51  ;;  %v1326_v50 = vshrl.u32 %v6044_v32, 16  ;;  %v1301_v51 = vpack.c.bf16 %v5943_v39, %v437_v35  ;;  %v1330_v39 = vrot.slane %v1328_v48, 1 }
  0x79   : > { %4986 = vmatprep.subr.bf16.mxu1 %v5737_v40 }
  0x7b   : > { %4706 = vmatpush3.bf16.msra.mxu0 %v5396_v52  ;;  %v1314_v52 = vshrl.u32 %v1298_v47, 16 }
  0x7c   : > { %4987 = vmatpush3.bf16.msra.mxu1 %v5397_v53  ;;  %4707 = vmatprep.subr.bf16.mxu0 %v5398_v54  ;;  %v5435_v53 = vld [vmem:[%s6775_s3 + $0x28] sm:$0xff]   ;;  %v1316_v54 = vshll.u32 %v1298_v47, 16 }
  0x7d   : > { %4988 = vmatprep.subr.bf16.mxu1 %v5737_v40 }
  0x7f   : > { %4708 = vmatpush3.bf16.msra.mxu0 %v5399_v55  ;;  %v1300_v55 = vpack.c.bf16 %v5953_v44, %v436_v43  ;;  %v5439_v44 = vld [vmem:[%s6775_s3 + $0x30] sm:$0xff]   ;;  %v5448_v43 = vld [vmem:[%s6775_s3 + $0x148] sm:$0xff]  }
  0x80   : > { %4989 = vmatpush3.bf16.msra.mxu1 %v5400_v56  ;;  %4709 = vmatprep.subr.bf16.mxu0 %v5401_v57  ;;  %v5436_v56 = vld [vmem:[%s6775_s3 + $0xa8] sm:$0xff]   ;;  %v5437_v57 = vld [vmem:[%s6775_s3 + $0x70] sm:$0xff]  }
  0x81   : > { %4990 = vmatprep.subr.bf16.mxu1 %v5737_v40  ;;  %v1338_v3 = vshrl.u32 %v1300_v55, 16 }
  0x83   : > { %4710 = vmatpush3.bf16.msra.mxu0 %v5402_v58  ;;  %v1352_v58 = vshll.u32 %v1301_v51, 16 }
  0x84   : > { %4991 = vmatpush3.bf16.msra.mxu1 %v5403_v59  ;;  %4711 = vmatprep.subr.bf16.mxu0 %v5404_v60  ;;  %v5438_v59 = vld [vmem:[%s6775_s3 + $0xf0] sm:$0xff]   ;;  %v1350_v60 = vshrl.u32 %v1301_v51, 16 }
  0x85   : > { %4992 = vmatprep.subr.bf16.mxu1 %v5737_v40  ;;  %v5451_v51 = vld [vmem:[%s6775_s3 + $0x150] sm:$0xff]  }
  0x87   : > { %4712 = vmatpush3.bf16.msra.mxu0 %v5405_v61  ;;  %v1340_v61 = vshll.u32 %v1300_v55, 16  ;;  %v5454_v55 = vld [vmem:[%s6775_s3 + $0x158] sm:$0xff]  }
  0x88   : > { %4993 = vmatpush3.bf16.msra.mxu1 %v5406_v62  ;;  %4713 = vmatprep.subr.bf16.mxu0 %v5407_v63  ;;  %v5440_v62 = vld [vmem:[%s6775_s3 + $0xb0] sm:$0xff]   ;;  %v1318_v63 = vrot.slane %v1316_v54, 1 }
  0x89   : > { %4994 = vmatprep.subr.bf16.mxu1 %v5737_v40  ;;  %v5453_v54 = vld [vmem:[%s6775_s3 + $0x190] sm:$0xff]  }
  0x8b   : > { %4714 = vmatpush3.bf16.msra.mxu0 %v5408_v0  ;;  %v5441_v0 = vld [vmem:[%s6775_s3 + $0x78] sm:$0xff]  }
  0x8c   : > { %4995 = vmatpush3.bf16.msra.mxu1 %v5409_v1  ;;  %4715 = vmatprep.subr.bf16.mxu0 %v5410_v2  ;;  %v1354_v1 = vrot.slane %v1352_v58, 1  ;;  %v5442_v2 = vld [vmem:[%s6775_s3 + $0xf8] sm:$0xff]  }
  0x8d   : > { %4996 = vmatprep.subr.bf16.mxu1 %v5737_v40 }
  0x8f   : > { %4716 = vmatpush3.bf16.msra.mxu0 %v5411_v5  ;;  %v5443_v5 = vld [vmem:[%s6775_s3 + $0x38] sm:$0xff]  }
  0x90   : > { %4997 = vmatpush3.bf16.msra.mxu1 %v5412_v6  ;;  %4732 = vmatprep.subr.bf16.mxu0 %v5413_v10  ;;  %v1342_v6 = vrot.slane %v1340_v61, 1  ;;  %v442_v10 = vld [vmem:[%s5925_s16 + $0x78] sm:$0x1]  ;;  %v5459_v61 = vld [vmem:[%s6775_s3 + $0x1a0] sm:$0xff]  }
  0x91   : > { %4754 = vmatprep.subr.bf16.mxu1 %v5414_v11  ;;  %v444_v11 = vld [vmem:[%s5925_s16 + $0x88] sm:$0x1]  ;;  %v1306_v12 = vpack.c.bf16 %v442_v10, %v442_v10  ;;  %v445_v10 = vld [vmem:[%s5925_s16 + $0x90] sm:$0x1] }
  0x92   : > { %1025 = vmatmul.mubr.bf16.vlgmr.msra.gmra.mrb[4].mxu0 %v5992_v14 }
  0x93   : > { %4999 = vmatmul.mubr.bf16.vlgmr.msra.gmra.mrb[4].mxu1 %v5995_v15  ;;  %4733 = vmatpush3.bf16.msra.mxu0 %v5415_v16  ;;  %v1308_v16 = vpack.c.bf16 %v444_v11, %v444_v11 }
  0x94   : > { %4755 = vmatpush3.bf16.msra.mxu1 %v5416_v17  ;;  %4734 = vmatprep.subr.bf16.mxu0 %v5417_v18  ;;  %v441_v17 = vld [vmem:[%s5925_s16 + $0x70] sm:$0x1]  ;;  %v443_v18 = vld [vmem:[%s5925_s16 + $0x80] sm:$0x1] }
  0x95   : > { %4756 = vmatprep.subr.bf16.mxu1 %v5418_v19  ;;  %v1305_v19 = vpack.c.bf16 %v441_v17, %v441_v17  ;;  %v1357_v25 = vshll.u32 %v1308_v16, 16  ;;  %v1309_v16 = vpack.c.bf16 %v445_v10, %v445_v10  ;;  %v5502_v10 = vld [vmem:[#allocation6 + $0x100] sm:$0xff]  }
  0x97   : > { %4735 = vmatpush3.bf16.msra.mxu0 %v5419_v20  ;;  %v1307_v20 = vpack.c.bf16 %v443_v18, %v443_v18  ;;  %v1359_v32 = vrot.slane %v1357_v25, 1  ;;  %v5464_v18 = vld [vmem:[%s6775_s3 + $0x130] sm:$0xff]   ;;  %v447_v25 = vld [vmem:[%s5925_s16 + $0xa0] sm:$0x1] }
  0x98   : > { %4757 = vmatpush3.bf16.msra.mxu1 %v5420_v21  ;;  %4736 = vmatprep.subr.bf16.mxu0 %v5421_v22  ;;  %v5445_v21 = vld [vmem:[%s6775_s3 + $0x140] sm:$0xff]   ;;  %v1331_v22 = vor.u32 %v1330_v39, %v1326_v50  ;;  %v5450_v50 = vld [vmem:[%s6775_s3 + $0x188] sm:$0xff]   ;;  %v440_v39 = vld [vmem:[%s5925_s16 + $0x30] sm:$0xfe] }
  0x99   : > { %4758 = vmatprep.subr.bf16.mxu1 %v5422_v23  ;;  %v1333_v23 = vshll.u32 %v1306_v12, 16  ;;  %v1345_v29 = vshll.u32 %v1307_v20, 16  ;;  %v5463_v12 = vld [vmem:[%s6775_s3 + $0x170] sm:$0xff]  }
  0x9b   : > { %4737 = vmatpush3.bf16.msra.mxu0 %v5423_v24  ;;  %v1355_v24 = vor.u32 %v1354_v1, %v1350_v60 }
  0x9c   : > { %4759 = vmatpush3.bf16.msra.mxu1 %v5424_v26  ;;  %4738 = vmatprep.subr.bf16.mxu0 %v5425_v27  ;;  %v1319_v26 = vor.u32 %v1318_v63, %v1314_v52  ;;  %v1321_v27 = vshll.u32 %v1305_v19, 16  ;;  %v438_v52 = vld [vmem:[%s5925_s16 + $0x20] sm:$0xfe] }
  0x9d   : > { %4760 = vmatprep.subr.bf16.mxu1 %v5426_v28  ;;  %v1343_v28 = vor.u32 %v1342_v6, %v1338_v3  ;;  %v1360_v47 = vsel %vm1312_vm1, %v1355_v24, %v1359_v32  ;;  %v1302_v58 = vpack.c.bf16 %v5977_v9, %v438_v52  ;;  %v5458_v9 = vld [vmem:[%s6775_s3 + $0x120] sm:$0xff]   ;;  %v446_v3 = vld [vmem:[%s5925_s16 + $0x98] sm:$0x1]  ;;  %v5462_v6 = vld [vmem:[%s6775_s3 + $0x1a8] sm:$0xff]   ;;  %v1369_v24 = vshll.u32 %v1309_v16, 16 }
  0x9e   : > { %v1323_v35 = vrot.slane %v1321_v27, 1  ;;  %1813 = vmatprep.mubr.bf16.mxu1 %v1360_v47  ;;  %v1311_v27 = vpack.c.bf16 %v447_v25, %v447_v25  ;;  %v5470_v47 = vld [vmem:[#allocation6] sm:$0xff]   ;;  %v5476_v52 = vld [vmem:[#allocation6 + $0x88] sm:$0xff]  }
  0x9f   : > { %4739 = vmatpush3.bf16.msra.mxu0 %v5427_v30  ;;  %v5446_v30 = vld [vmem:[%s6775_s3 + $0x100] sm:$0xff]   ;;  %v1362_v1 = vshrl.u32 %v1302_v58, 16  ;;  %v5505_v16 = vld [vmem:[#allocation6 + $0x108] sm:$0xff]  }
  0xa0   : > { %4761 = vmatpush3.bf16.msra.mxu1 %v5428_v31  ;;  %4740 = vmatprep.subr.bf16.mxu0 %v5429_v38  ;;  %v1335_v31 = vrot.slane %v1333_v23, 1  ;;  %v1347_v38 = vrot.slane %v1345_v29, 1  ;;  %v5517_v25 = vld [vmem:[#allocation6 + $0x128] sm:$0xff]  }
  0xa1   : > { %4762 = vmatprep.subr.bf16.mxu1 %v5430_v42  ;;  %v5447_v42 = vld [vmem:[%s6775_s3 + $0x180] sm:$0xff]  }
  0xa2   : > { %v1348_v48 = vsel %vm1312_vm1, %v1343_v28, %v1347_v38  ;;  %v5467_v28 = vld [vmem:[%s6775_s3 + $0x138] sm:$0xff]   ;;  %v5469_v38 = vld [vmem:[#allocation6 + $0x40] sm:$0xff]  }
  0xa3   : > { %4741 = vmatpush3.bf16.msra.mxu0 %v5431_v46  ;;  %v1336_v46 = vsel %vm1312_vm1, %v1331_v22, %v1335_v31  ;;  %v1393_v31 = vshll.u32 %v1311_v27, 16  ;;  %v5519_v27 = vld [vmem:[#allocation6 + $0x170] sm:$0xff]  }
  0xa4   : > { %4763 = vmatpush3.bf16.msra.mxu1 %v5432_v33  ;;  %4742 = vmatprep.subr.bf16.mxu0 %v5433_v49  ;;  %v1324_v33 = vsel %vm1312_vm1, %v1319_v26, %v1323_v35  ;;  %v5449_v49 = vld [vmem:[%s6775_s3 + $0x108] sm:$0xff]   ;;  %v5466_v26 = vld [vmem:[%s6775_s3 + $0x178] sm:$0xff]   ;;  %v1371_v35 = vrot.slane %v1369_v24, 1 }
  0xa5   : > { %4764 = vmatprep.subr.bf16.mxu1 %v5434_v36  ;;  %1772 = vmatprep.mubr.bf16.mxu0 %v1336_v46  ;;  %v439_v36 = vld [vmem:[%s5925_s16 + $0x28] sm:$0xfe]  ;;  %v1395_v46 = vrot.slane %v1393_v31, 1  ;;  %v5523_v31 = vld [vmem:[#allocation6 + $0x138] sm:$0xff]   ;;  %s407_s16 = sand.u32 1, %s5723_s18  }
  0xa6   : > { %v5516_v24 = vld [vmem:[#allocation6 + $0x168] sm:$0xff]   ;;  %s408_s24 = scalar_lea.vmem [#allocation8], %s407_s16  ;;  %s4142_s21 = scalar_lea.sflag [#allocation5], %s407_s16 }
  0xa7   : > { %4743 = vmatpush3.bf16.msra.mxu0 %v5435_v53  ;;  %v5452_v53 = vld [vmem:[%s6775_s3 + $0x110] sm:$0xff]   ;;  %s4154_s25 = sshll.u32 %s408_s24, 4  ;;  %s6732_s25 = int_to_ptr.vmem [resolvable:$true] %s4154_s25 }
  0xa8   : > { %4765 = vmatpush3.bf16.msra.mxu1 %v5436_v56  ;;  %4744 = vmatprep.subr.bf16.mxu0 %v5437_v57  ;;  %v1303_v56 = vpack.c.bf16 %v5970_v4, %v439_v36  ;;  %v5455_v57 = vld [vmem:[%s6775_s3 + $0x118] sm:$0xff]   ;;  %v5457_v4 = vld [vmem:[%s6775_s3 + $0x160] sm:$0xff]   ;;  %v5474_v36 = vld [vmem:[#allocation6 + $0x8] sm:$0xff]   ;;  %s5661_s17 = scalar_lea.vmem %s6732_s25, 16  ;;  %p5668_p4 = scmp.lt.s32.totalorder %s6732_s25, %s5666_s28 }
  0xa9   : > { %4766 = vmatprep.subr.bf16.mxu1 %v5438_v59  ;;  %v5456_v59 = vld [vmem:[%s6775_s3 + $0x198] sm:$0xff]   ;;  %p5662_p10 = scmp.ne.s32.totalorder %s6732_s25, %s5661_s17  ;;  %p5669_p7 = scmp.lt.s32.totalorder %s5667_s29, %s5661_s17 }
  0xaa   : > { %v1376_v60 = vshll.u32 %v1303_v56, 16  ;;  %v1374_v63 = vshrl.u32 %v1303_v56, 16  ;;  %v5480_v56 = vld [vmem:[#allocation6 + $0x90] sm:$0xff]  }
  0xab   : > { %4745 = vmatpush3.bf16.msra.mxu0 %v5439_v44  ;;  %v1304_v44 = vpack.c.bf16 %v5989_v13, %v440_v39  ;;  %v5460_v13 = vld [vmem:[%s6775_s3 + $0x168] sm:$0xff]   ;;  %v5481_v39 = vld [vmem:[#allocation6 + $0x58] sm:$0xff]   ;;  %p5663_p2 = pnand %p5662_p10, %p6806_p1  ;;  %p5670_p8 = por %p5669_p7, %p5668_p4 }
  0xac   : > { %4767 = vmatpush3.bf16.msra.mxu1 %v5440_v62  ;;  %4746 = vmatprep.subr.bf16.mxu0 %v5441_v0  ;;  %v1364_v62 = vshll.u32 %v1302_v58, 16  ;;  %v1378_v0 = vrot.slane %v1376_v60, 1  ;;  %v5482_v58 = vld [vmem:[#allocation6 + $0x18] sm:$0xff]   ;;  %v5487_v60 = vld [vmem:[#allocation6 + $0xe0] sm:$0xff]  }
  0xad   : > { %4768 = vmatprep.subr.bf16.mxu1 %v5442_v2  ;;  %v5461_v2 = vld [vmem:[%s6775_s3 + $0x128] sm:$0xff]   ;;  %v1386_v17 = vshrl.u32 %v1304_v44, 16  ;;  %p5664_p3 = pneg %p5663_p2 }
  0xae   : > { %v1366_v11 = vrot.slane %v1364_v62, 1  ;;  %v1379_v19 = vor.u32 %v1378_v0, %v1374_v63  ;;  %v5492_v62 = vld [vmem:[#allocation6 + $0xa8] sm:$0xff]   ;;  %v5493_v63 = vld [vmem:[#allocation6 + $0x70] sm:$0xff]  }
  0xaf   : > { %4747 = vmatpush3.bf16.msra.mxu0 %v5443_v5  ;;  %v1388_v5 = vshll.u32 %v1304_v44, 16  ;;  %v5486_v44 = vld [vmem:[#allocation6 + $0x20] sm:$0xff]   ;;  %v5494_v0 = vld [vmem:[#allocation6 + $0x30] sm:$0xff]   ;;  %p5671_p11 = pnand %p5670_p8, %p5664_p3 }
  0xb0   : > { %4769 = vmatpush3.bf16.msra.mxu1 %v5444_v8  ;;  %4776 = vmatprep.subr.bf16.mxu0 %v5445_v21  ;;  %v1310_v8 = vpack.c.bf16 %v446_v3, %v446_v3  ;;  %v5465_v21 = vld [vmem:[%s6775_s3 + $0x1b0] sm:$0xff]   ;;  %v1367_v32 = vor.u32 %v1366_v11, %v1362_v1  ;;  %v5499_v3 = vld [vmem:[#allocation6 + $0xf8] sm:$0xff]   ;;  %v5503_v11 = vld [vmem:[#allocation6 + $0x180] sm:$0xff]  }
  0xb1   : > { %5002 = vmatprep.subr.bf16.mxu1 %v5737_v40  ;;  %v1390_v22 = vrot.slane %v1388_v5, 1  ;;  %v5496_v1 = vld [vmem:[#allocation6 + $0xb0] sm:$0xff]   ;;  %v5498_v5 = vld [vmem:[#allocation6 + $0x38] sm:$0xff]  }
  0xb2   : > { %1773 = vmatmul.mubr.bf16.vlgmr.msra.gmra.mrb[8].mxu0 %v1324_v33  ;;  %v1381_v20 = vshll.u32 %v1310_v8, 16  ;;  %v5472_v33 = vld [vmem:[#allocation6 + $0x80] sm:$0xff]  }
  0xb3   : > { %1814 = vmatmul.mubr.bf16.vlgmr.msra.gmra.mrb[8].mxu1 %v1348_v48  ;;  %4777 = vmatpush3.bf16.msra.mxu0 %v5446_v30  ;;  %v5468_v30 = vld [vmem:[%s6775_s3 + $0x1b8] sm:$0xff]   ;;  %v1372_v48 = vsel %vm1312_vm1, %v1367_v32, %v1371_v35  ;;  %v5501_v8 = vld [vmem:[#allocation6 + $0x140] sm:$0xff]  }
  0xb4   : > { %5003 = vmatpush3.bf16.msra.mxu1 %v5447_v42  ;;  %4778 = vmatprep.subr.bf16.mxu0 %v5448_v43  ;;  %v1383_v23 = vrot.slane %v1381_v20, 1  ;;  %v1391_v42 = vor.u32 %v1390_v22, %v1386_v17  ;;  %v5471_v43 = vld [vmem:[#allocation6 + $0xc0] sm:$0xff]   ;;  %v5506_v17 = vld [vmem:[#allocation6 + $0x188] sm:$0xff]   ;;  %v5509_v20 = vld [vmem:[#allocation6 + $0x190] sm:$0xff]  }
  0xb5   : > { %5004 = vmatprep.subr.bf16.mxu1 %v5737_v40  ;;  %5018 = vmatprep.mubr.msk.bf16.mxu1 %vm5738_vm0, %v5737_v40  ;;  %v5513_v22 = vld [vmem:[#allocation6 + $0x160] sm:$0xff]   ;;  %v5524_v32 = vld [vmem:[#allocation6 + $0x1b8] sm:$0xff]  }
  0xb6   : > { %v1384_v29 = vsel %vm1312_vm1, %v1379_v19, %v1383_v23  ;;  %v5508_v19 = vld [vmem:[#allocation6 + $0x110] sm:$0xff]   ;;  %v5515_v23 = vld [vmem:[#allocation6 + $0x1a0] sm:$0xff]  }
  0xb7   : > { %4779 = vmatpush3.bf16.msra.mxu0 %v5449_v49  ;;  %1854 = vmatprep.mubr.bf16.mxu0 %v1384_v29  ;;  %v1396_v49 = vsel %vm1312_vm1, %v1391_v42, %v1395_v46  ;;  %v5521_v29 = vld [vmem:[#allocation6 + $0x1b0] sm:$0xff]  }
  0xb8   : > { %5005 = vmatpush3.bf16.msra.mxu1 %v5450_v50  ;;  %4780 = vmatprep.subr.bf16.mxu0 %v5451_v51  ;;  %v5473_v50 = vld [vmem:[#allocation6 + $0x48] sm:$0xff]  }
  0xb9   : > { %5006 = vmatprep.subr.bf16.mxu1 %v5737_v40  ;;  %v5475_v51 = vld [vmem:[#allocation6 + $0xc8] sm:$0xff]  }
  0xbb   : > { %4781 = vmatpush3.bf16.msra.mxu0 %v5452_v53  ;;  %v5477_v53 = vld [vmem:[#allocation6 + $0x50] sm:$0xff]  }
  0xbc   : > { %5007 = vmatpush3.bf16.msra.mxu1 %v5453_v54  ;;  %4782 = vmatprep.subr.bf16.mxu0 %v5454_v55  ;;  %v5479_v54 = vld [vmem:[#allocation6 + $0xd0] sm:$0xff]  }
  0xbd   : > { %5008 = vmatprep.subr.bf16.mxu1 %v5737_v40  ;;  %v5478_v55 = vld [vmem:[#allocation6 + $0x10] sm:$0xff]  }
  0xbf   : > { %4783 = vmatpush3.bf16.msra.mxu0 %v5455_v57  ;;  %v5483_v57 = vld [vmem:[#allocation6 + $0xd8] sm:$0xff]  }
  0xc0   : > { %5009 = vmatpush3.bf16.msra.mxu1 %v5456_v59  ;;  %4784 = vmatprep.subr.bf16.mxu0 %v5457_v4  ;;  %v5484_v59 = vld [vmem:[#allocation6 + $0x98] sm:$0xff]   ;;  %v5485_v4 = vld [vmem:[#allocation6 + $0x60] sm:$0xff]  }
  0xc1   : > { %5010 = vmatprep.subr.bf16.mxu1 %v5737_v40 }
  0xc3   : > { %4785 = vmatpush3.bf16.msra.mxu0 %v5458_v9  ;;  %v5488_v9 = vld [vmem:[#allocation6 + $0xa0] sm:$0xff]  }
  0xc4   : > { %5011 = vmatpush3.bf16.msra.mxu1 %v5459_v61  ;;  %4786 = vmatprep.subr.bf16.mxu0 %v5460_v13  ;;  %v5490_v61 = vld [vmem:[#allocation6 + $0x28] sm:$0xff]   ;;  %v5495_v13 = vld [vmem:[#allocation6 + $0xf0] sm:$0xff]  }
  0xc5   : > { %5012 = vmatprep.subr.bf16.mxu1 %v5737_v40 }
  0xc7   : > { %4787 = vmatpush3.bf16.msra.mxu0 %v5461_v2  ;;  %v5497_v2 = vld [vmem:[#allocation6 + $0x78] sm:$0xff]  }
  0xc8   : > { %5013 = vmatpush3.bf16.msra.mxu1 %v5462_v6  ;;  %4788 = vmatprep.subr.bf16.mxu0 %v5463_v12  ;;  %v5500_v6 = vld [vmem:[#allocation6 + $0xb8] sm:$0xff]   ;;  %v5504_v12 = vld [vmem:[#allocation6 + $0x148] sm:$0xff]  }
  0xc9   : > { %5014 = vmatprep.subr.bf16.mxu1 %v5737_v40 }
  0xcb   : > { %4789 = vmatpush3.bf16.msra.mxu0 %v5464_v18  ;;  %v5507_v18 = vld [vmem:[#allocation6 + $0x150] sm:$0xff]  }
  0xcc   : > { %5015 = vmatpush3.bf16.msra.mxu1 %v5465_v21  ;;  %4790 = vmatprep.subr.bf16.mxu0 %v5466_v26  ;;  %v5512_v21 = vld [vmem:[#allocation6 + $0x198] sm:$0xff]   ;;  %v5518_v26 = vld [vmem:[#allocation6 + $0x1a8] sm:$0xff]  }
  0xcd   : > { %5016 = vmatprep.subr.bf16.mxu1 %v5737_v40 }
  0xcf   : > { %4791 = vmatpush3.bf16.msra.mxu0 %v5467_v28  ;;  %v5520_v28 = vld [vmem:[#allocation6 + $0x130] sm:$0xff]  }
  0xd0   : > { %5017 = vmatpush3.bf16.msra.mxu1 %v5468_v30  ;;  %4807 = vmatprep.subr.bf16.mxu0 %v5469_v38  ;;  %v5522_v30 = vld [vmem:[#allocation6 + $0x178] sm:$0xff]   ;;  %v6229_v38 = vld [vmem:[%s6776_s4] ss:$0 sm:$0xff] }
  0xd1   : > { %4829 = vmatprep.subr.bf16.mxu1 %v5471_v43 }
  0xd2   : > { %1855 = vmatmul.mubr.bf16.vlgmr.msra.gmra.mrb[12].mxu0 %v1372_v48 }
  0xd3   : > { %5019 = vmatmul.mubr.bf16.vlgmr.msra.gmra.mrb[12].mxu1 %v1396_v49  ;;  %4808 = vmatpush3.bf16.msra.mxu0 %v5470_v47 }
  0xd4   : > { %4830 = vmatpush3.bf16.msra.mxu1 %v5472_v33  ;;  %4809 = vmatprep.subr.bf16.mxu0 %v5473_v50 }
  0xd5   : > { %4831 = vmatprep.subr.bf16.mxu1 %v5475_v51  ;;  %2272 = vmatprep.mubr.bf16.mxu0 %v5932_v34  ;;  %v5489_v34 = vld [vmem:[#allocation6 + $0x68] sm:$0xff]  }
  0xd6   : > { %2313 = vmatprep.mubr.bf16.mxu1 %v5948_v41  ;;  %v5491_v41 = vld [vmem:[#allocation6 + $0xe8] sm:$0xff]  }
  0xd7   : > { %4810 = vmatpush3.bf16.msra.mxu0 %v5474_v36 }
  0xd8   : > { %4832 = vmatpush3.bf16.msra.mxu1 %v5476_v52  ;;  %4811 = vmatprep.subr.bf16.mxu0 %v5477_v53 }
  0xd9   : > { %4833 = vmatprep.subr.bf16.mxu1 %v5479_v54 }
  0xdb   : > { %4812 = vmatpush3.bf16.msra.mxu0 %v5478_v55 }
  0xdc   : > { %4834 = vmatpush3.bf16.msra.mxu1 %v5480_v56  ;;  %4813 = vmatprep.subr.bf16.mxu0 %v5481_v39 }
  0xdd   : > { %4835 = vmatprep.subr.bf16.mxu1 %v5483_v57 }
  0xdf   : > { %4814 = vmatpush3.bf16.msra.mxu0 %v5482_v58 }
  0xe0   : > { %4836 = vmatpush3.bf16.msra.mxu1 %v5484_v59  ;;  %4815 = vmatprep.subr.bf16.mxu0 %v5485_v4 }
  0xe1   : > { %4837 = vmatprep.subr.bf16.mxu1 %v5487_v60 }
  0xe3   : > { %4816 = vmatpush3.bf16.msra.mxu0 %v5486_v44 }
  0xe4   : > { %4838 = vmatpush3.bf16.msra.mxu1 %v5488_v9  ;;  %4817 = vmatprep.subr.bf16.mxu0 %v5489_v34 }
  0xe5   : > { %4839 = vmatprep.subr.bf16.mxu1 %v5491_v41 }
  0xe7   : > { %4818 = vmatpush3.bf16.msra.mxu0 %v5490_v61 }
  0xe8   : > { %4840 = vmatpush3.bf16.msra.mxu1 %v5492_v62  ;;  %4819 = vmatprep.subr.bf16.mxu0 %v5493_v63  ;;  %v5525_v63 = vld [vmem:[%s6777_s5] sm:$0xff]  }
  0xe9   : > { %4841 = vmatprep.subr.bf16.mxu1 %v5495_v13  ;;  %v5526_v13 = vld [vmem:[%s6777_s5 + $0x8] sm:$0xff]  }
  0xeb   : > { %4820 = vmatpush3.bf16.msra.mxu0 %v5494_v0  ;;  %v5527_v0 = vld [vmem:[%s6777_s5 + $0x10] sm:$0xff]  }
  0xec   : > { %4842 = vmatpush3.bf16.msra.mxu1 %v5496_v1  ;;  %4821 = vmatprep.subr.bf16.mxu0 %v5497_v2  ;;  %v5528_v1 = vld [vmem:[%s6777_s5 + $0x18] sm:$0xff]  }
  0xed   : > { %4843 = vmatprep.subr.bf16.mxu1 %v5499_v3 }
  0xef   : > { %4822 = vmatpush3.bf16.msra.mxu0 %v5498_v5 }
  0xf0   : > { %4844 = vmatpush3.bf16.msra.mxu1 %v5500_v6  ;;  %4851 = vmatprep.subr.bf16.mxu0 %v5501_v8 }
  0xf1   : > { %5022 = vmatprep.subr.bf16.mxu1 %v5737_v40 }
  0xf2   : > { %2273 = vmatmul.mubr.bf16.vlgmr.msra.gmra.mrb[16].mxu0 %v5939_v37  ;;  %v5510_v37 = vld [vmem:[#allocation6 + $0x158] sm:$0xff]  }
  0xf3   : > { %2314 = vmatmul.mubr.bf16.vlgmr.msra.gmra.mrb[16].mxu1 %v5957_v45  ;;  %4852 = vmatpush3.bf16.msra.mxu0 %v5502_v10  ;;  %v5511_v45 = vld [vmem:[#allocation6 + $0x118] sm:$0xff]  }
  0xf4   : > { %5023 = vmatpush3.bf16.msra.mxu1 %v5503_v11  ;;  %4853 = vmatprep.subr.bf16.mxu0 %v5504_v12 }
  0xf5   : > { %5024 = vmatprep.subr.bf16.mxu1 %v5737_v40  ;;  %2354 = vmatprep.mubr.bf16.mxu0 %v5973_v7  ;;  %v5514_v7 = vld [vmem:[#allocation6 + $0x120] sm:$0xff]  }
  0xf6   : > { %5038 = vmatprep.mubr.msk.bf16.mxu1 %vm5738_vm0, %v5737_v40 }
  0xf7   : > { %4854 = vmatpush3.bf16.msra.mxu0 %v5505_v16 }
  0xf8   : > { %5025 = vmatpush3.bf16.msra.mxu1 %v5506_v17  ;;  %4855 = vmatprep.subr.bf16.mxu0 %v5507_v18 }
  0xf9   : > { %5026 = vmatprep.subr.bf16.mxu1 %v5737_v40 }
  0xfb   : > { %4856 = vmatpush3.bf16.msra.mxu0 %v5508_v19 }
  0xfc   : > { %5027 = vmatpush3.bf16.msra.mxu1 %v5509_v20  ;;  %4857 = vmatprep.subr.bf16.mxu0 %v5510_v37 }
  0xfd   : > { %5028 = vmatprep.subr.bf16.mxu1 %v5737_v40 }
  0xff   : > { %4858 = vmatpush3.bf16.msra.mxu0 %v5511_v45 }
 0x100   : > { %5029 = vmatpush3.bf16.msra.mxu1 %v5512_v21  ;;  %4859 = vmatprep.subr.bf16.mxu0 %v5513_v22 }
 0x101   : > { %5030 = vmatprep.subr.bf16.mxu1 %v5737_v40 }
 0x103   : > { %4860 = vmatpush3.bf16.msra.mxu0 %v5514_v7 }
 0x104   : > { %5031 = vmatpush3.bf16.msra.mxu1 %v5515_v23  ;;  %4861 = vmatprep.subr.bf16.mxu0 %v5516_v24 }
 0x105   : > { %5032 = vmatprep.subr.bf16.mxu1 %v5737_v40 }
 0x107   : > { %4862 = vmatpush3.bf16.msra.mxu0 %v5517_v25 }
 0x108   : > { %5033 = vmatpush3.bf16.msra.mxu1 %v5518_v26  ;;  %4863 = vmatprep.subr.bf16.mxu0 %v5519_v27 }
 0x109   : > { %5034 = vmatprep.subr.bf16.mxu1 %v5737_v40 }
 0x10b   : > { %4864 = vmatpush3.bf16.msra.mxu0 %v5520_v28 }
 0x10c   : > { %5035 = vmatpush3.bf16.msra.mxu1 %v5521_v29  ;;  %4865 = vmatprep.subr.bf16.mxu0 %v5522_v30 }
 0x10d   : > { %5036 = vmatprep.subr.bf16.mxu1 %v5737_v40 }
 0x10f   : > { %4866 = vmatpush3.bf16.msra.mxu0 %v5523_v31 }
 0x110   : > { %5037 = vmatpush3.bf16.msra.mxu1 %v5524_v32  ;;  %5042 = vmatprep.subr.bf16.mxu0 %v5737_v40 }
 0x111   : > { %5078 = vmatprep.subr.bf16.mxu1 %v5737_v40 }
 0x112   : > { %2355 = vmatmul.mubr.bf16.vlgmr.msra.gmra.mrb[20].mxu0 %v5992_v14 }
 0x113   : > { %5039 = vmatmul.mubr.bf16.vlgmr.msra.gmra.mrb[20].mxu1 %v5995_v15  ;;  %5050 = vmatprep.mubr.msk.bf16.mxu0 %vm5738_vm0, %v5737_v40 }
 0x114   : > { %5086 = vmatprep.mubr.msk.bf16.mxu1 %vm5738_vm0, %v5737_v40  ;;  %5043 = vmatpush3.bf16.msra.mxu0 %v5525_v63 }
 0x115   : > { %5044 = vmatprep.subr.bf16.mxu0 %v5737_v40 }
 0x118   : > { %5045 = vmatpush3.bf16.msra.mxu0 %v5526_v13 }
 0x119   : > { %5046 = vmatprep.subr.bf16.mxu0 %v5737_v40 }
 0x11c   : > { %5047 = vmatpush3.bf16.msra.mxu0 %v5527_v0 }
 0x11d   : > { %5048 = vmatprep.subr.bf16.mxu0 %v5737_v40 }
 0x120   : > { %5049 = vmatpush3.bf16.msra.mxu0 %v5528_v1 }
 0x121   : > { %5054 = vmatprep.subr.bf16.mxu0 %v5737_v40 }
 0x145   : > { %v4673_v35 = vpop.f32.mrb[0].mxu0 }
 0x146   : > { %v4674_v42 = vpop.f32.mrb[1].mxu0  ;;  %v4695_v47 = vpop.f32.mrb[0].mxu1 }
 0x147   : > { %v4675_v43 = vadd.f32 %v4674_v42, %v4673_v35  ;;  %v4676_v46 = vpop.f32.mrb[2].mxu0  ;;  %v4696_v48 = vpop.f32.mrb[1].mxu1 }
 0x148   : > { %v4677_v33 = vpop.f32.mrb[3].mxu0  ;;  %v4697_v49 = vadd.f32 %v4696_v48, %v4695_v47  ;;  %v4698_v50 = vpop.f32.mrb[2].mxu1 }
 0x149   : > { %v945_v14 = vadd.f32 %v4675_v43, %v6229_v38  ;;  %v4678_v15 = vadd.f32 %v4677_v33, %v4676_v46  ;;  %v4699_v36 = vpop.f32.mrb[3].mxu1 }
 0x14a   : > { %v4700_v53 = vadd.f32 %v4699_v36, %v4698_v50 }
 0x14b   : > { %v948_v51 = vadd.f32 %v4678_v15, %v6229_v38  ;;  %v986_v52 = vadd.f32 %v4697_v49, %v945_v14 }
 0x14d   : > { %v989_v54 = vadd.f32 %v4700_v53, %v948_v51 }
 0x165   : > { %v4717_v55 = vpop.f32.mrb[4].mxu0 }
 0x166   : > { %v4718_v56 = vpop.f32.mrb[5].mxu0  ;;  %v1067_v39 = vpop.f32.mrb[4].mxu1 }
 0x167   : > { %v4719_v57 = vadd.f32 %v4718_v56, %v4717_v55  ;;  %v4720_v58 = vpop.f32.mrb[6].mxu0  ;;  %v5000_v59 = vpop.f32.mrb[5].mxu1 }
 0x168   : > { %v4721_v4 = vpop.f32.mrb[7].mxu0  ;;  %v1070_v60 = vpop.f32.mrb[6].mxu1 }
 0x169   : > { %v4722_v44 = vadd.f32 %v4721_v4, %v4720_v58  ;;  %v1027_v9 = vadd.f32 %v4719_v57, %v986_v52  ;;  %v5001_v34 = vpop.f32.mrb[7].mxu1 }
 0x16b   : > { %v6233_v41 = vadd.f32 %v1067_v39, %v1027_v9  ;;  %v1030_v61 = vadd.f32 %v4722_v44, %v989_v54 }
 0x16d   : > { %v6243_v62 = vadd.f32 %v1070_v60, %v1030_v61 }
 0x185   : > { %v4748_v2 = vpop.f32.mrb[8].mxu0 }
 0x186   : > { %v4770_v3 = vpop.f32.mrb[8].mxu1  ;;  %v4749_v5 = vpop.f32.mrb[9].mxu0 }
 0x187   : > { %v4771_v6 = vpop.f32.mrb[9].mxu1  ;;  %v4750_v8 = vadd.f32 %v4749_v5, %v4748_v2  ;;  %v4751_v11 = vpop.f32.mrb[10].mxu0 }
 0x188   : > { %v4772_v10 = vadd.f32 %v4771_v6, %v4770_v3  ;;  %v4773_v12 = vpop.f32.mrb[10].mxu1  ;;  %v4752_v16 = vpop.f32.mrb[11].mxu0 }
 0x189   : > { %v4774_v17 = vpop.f32.mrb[11].mxu1  ;;  %v4753_v19 = vadd.f32 %v4752_v16, %v4751_v11  ;;  %v5529_v11 = vld [vmem:[%s6777_s5 + $0x20] sm:$0xff]  }
 0x18a   : > { %v1816_v18 = vadd.f32 %v4772_v10, %v4750_v8  ;;  %v4775_v20 = vadd.f32 %v4774_v17, %v4773_v12 }
 0x18c   : > { %v1819_v37 = vadd.f32 %v4775_v20, %v4753_v19  ;;  %v5534_v20 = vld [vmem:[%s6777_s5 + $0x48] sm:$0xff]  }
 0x1a5   : > { %v4792_v45 = vpop.f32.mrb[12].mxu0 }
 0x1a6   : > { %v1897_v21 = vpop.f32.mrb[12].mxu1  ;;  %v4793_v22 = vpop.f32.mrb[13].mxu0 }
 0x1a7   : > { %v5020_v7 = vpop.f32.mrb[13].mxu1  ;;  %v4794_v23 = vadd.f32 %v4793_v22, %v4792_v45  ;;  %v4795_v24 = vpop.f32.mrb[14].mxu0  ;;  %v5536_v45 = vld [vmem:[%s6777_s5 + $0x58] sm:$0xff]  }
 0x1a8   : > { %v1900_v25 = vpop.f32.mrb[14].mxu1  ;;  %v4796_v26 = vpop.f32.mrb[15].mxu0 }
 0x1a9   : > { %v5021_v27 = vpop.f32.mrb[15].mxu1  ;;  %v4797_v28 = vadd.f32 %v4796_v26, %v4795_v24  ;;  %v1857_v29 = vadd.f32 %v4794_v23, %v1816_v18  ;;  %v5533_v18 = vld [vmem:[%s6777_s5 + $0x40] sm:$0xff]   ;;  %v5538_v24 = vld [vmem:[%s6779_s7 + $0x28] sm:$0xff]   ;;  %v5540_v26 = vld [vmem:[%s6779_s7 + $0x38] sm:$0xff]  }
 0x1aa   : > { %v5537_v23 = vld [vmem:[%s6779_s7 + $0x20] sm:$0xff]  }
 0x1ab   : > { %v1898_v30 = vadd.f32 %v1897_v21, %v1857_v29  ;;  %v1860_v31 = vadd.f32 %v4797_v28, %v1819_v37  ;;  %v5535_v37 = vld [vmem:[%s6777_s5 + $0x50] sm:$0xff]   ;;  %5079 = vmatpush3.bf16.msra.mxu1 %v5537_v23  ;;  %v4414_v27 = vld [vmem:[%s6778_s6] ss:$0 sm:$0xff] }
 0x1ac   : > { %5080 = vmatprep.subr.bf16.mxu1 %v5737_v40  ;;  %v5554_v23 = vld [vmem:[%s6779_s7 + $0x80] sm:$0xff]  }
 0x1ad   : > { %v1901_v32 = vadd.f32 %v1900_v25, %v1860_v31  ;;  %v5539_v25 = vld [vmem:[%s6779_s7 + $0x30] sm:$0xff]  }
 0x1af   : > { %5081 = vmatpush3.bf16.msra.mxu1 %v5538_v24  ;;  %v5555_v24 = vld [vmem:[%s6779_s7 + $0xa8] sm:$0xff]  }
 0x1b0   : > { %5082 = vmatprep.subr.bf16.mxu1 %v5737_v40 }
 0x1b3   : > { %5083 = vmatpush3.bf16.msra.mxu1 %v5539_v25  ;;  %v5556_v25 = vld [vmem:[%s6779_s7 + $0x88] sm:$0xff]  }
 0x1b4   : > { %5084 = vmatprep.subr.bf16.mxu1 %v5737_v40 }
 0x1b7   : > { %5085 = vmatpush3.bf16.msra.mxu1 %v5540_v26  ;;  %v5557_v26 = vld [vmem:[%s6779_s7 + $0xb0] sm:$0xff]  }
 0x1b8   : > { %5090 = vmatprep.subr.bf16.mxu1 %v5737_v40 }
 0x1c5   : > { %v4823_v35 = vpop.f32.mrb[16].mxu0 }
 0x1c6   : > { %v4845_v42 = vpop.f32.mrb[16].mxu1  ;;  %v4824_v43 = vpop.f32.mrb[17].mxu0 }
 0x1c7   : > { %v4846_v46 = vpop.f32.mrb[17].mxu1  ;;  %v4825_v47 = vadd.f32 %v4824_v43, %v4823_v35  ;;  %v4826_v33 = vpop.f32.mrb[18].mxu0 }
 0x1c8   : > { %v4847_v14 = vadd.f32 %v4846_v46, %v4845_v42  ;;  %v4848_v15 = vpop.f32.mrb[18].mxu1  ;;  %v4827_v48 = vpop.f32.mrb[19].mxu0 }
 0x1c9   : > { %v4849_v49 = vpop.f32.mrb[19].mxu1  ;;  %v2275_v50 = vadd.f32 %v4825_v47, %v1898_v30  ;;  %v4828_v51 = vadd.f32 %v4827_v48, %v4826_v33 }
 0x1ca   : > { %v4850_v36 = vadd.f32 %v4849_v49, %v4848_v15 }
 0x1cb   : > { %v2278_v52 = vadd.f32 %v4828_v51, %v1901_v32  ;;  %v2316_v53 = vadd.f32 %v4847_v14, %v2275_v50 }
 0x1cd   : > { %v2319_v54 = vadd.f32 %v4850_v36, %v2278_v52 }
 0x1e5   : > { %v4867_v55 = vpop.f32.mrb[20].mxu0 }
 0x1e6   : > { %v2397_v56 = vpop.f32.mrb[20].mxu1  ;;  %v4868_v39 = vpop.f32.mrb[21].mxu0 }
 0x1e7   : > { %v5040_v57 = vpop.f32.mrb[21].mxu1  ;;  %v4869_v58 = vadd.f32 %v4868_v39, %v4867_v55  ;;  %v4870_v59 = vpop.f32.mrb[22].mxu0  ;;  %v5543_v39 = vld [vmem:[%s6779_s7 + $0x10] sm:$0xff]  }
 0x1e8   : > { %v2400_v4 = vpop.f32.mrb[22].mxu1  ;;  %v4871_v60 = vpop.f32.mrb[23].mxu0  ;;  %v5544_v57 = vld [vmem:[%s6779_s7 + $0x18] sm:$0xff]  }
 0x1e9   : > { %v5041_v44 = vpop.f32.mrb[23].mxu1  ;;  %v2357_v9 = vadd.f32 %v4869_v58, %v2316_v53  ;;  %v4872_v34 = vadd.f32 %v4871_v60, %v4870_v59  ;;  %v5545_v60 = vld [vmem:[%s6779_s7 + $0x60] sm:$0xff]  }
 0x1ea   : > { %v5546_v44 = vld [vmem:[%s6779_s7 + $0x40] sm:$0xff]  }
 0x1eb   : > { %v2398_v61 = vadd.f32 %v2397_v56, %v2357_v9  ;;  %v2360_v63 = vadd.f32 %v4872_v34, %v2319_v54  ;;  %v5541_v54 = vld [vmem:[%s6779_s7] sm:$0xff]   ;;  %v5542_v56 = vld [vmem:[%s6779_s7 + $0x8] sm:$0xff]  }
 0x1ec   : > { %v5547_v9 = vld [vmem:[%s6779_s7 + $0x68] sm:$0xff]  }
 0x1ed   : > { %v2404_v13 = vadd.f32 %v6229_v38, %v2398_v61  ;;  %v2401_v0 = vadd.f32 %v2400_v4, %v2360_v63  ;;  %v5548_v34 = vld [vmem:[%s6779_s7 + $0x48] sm:$0xff]   ;;  %v5549_v61 = vld [vmem:[%s6779_s7 + $0x70] sm:$0xff]  }
 0x1ee   : > { %v5550_v63 = vld [vmem:[%s6779_s7 + $0x50] sm:$0xff]  }
 0x1ef   : > { %v2406_v1 = vmax.f32 %v6233_v41, %v2404_v13  ;;  %v2405_v2 = vadd.f32 %v6229_v38, %v2401_v0  ;;  %v5530_v38 = vld [vmem:[%s6777_s5 + $0x28] sm:$0xff]   ;;  %v5531_v41 = vld [vmem:[%s6777_s5 + $0x30] sm:$0xff]   ;;  %v5551_v13 = vld [vmem:[%s6779_s7 + $0x78] sm:$0xff]  }
 0x1f0   : > { %v5552_v0 = vld [vmem:[%s6779_s7 + $0x58] sm:$0xff]  }
 0x1f1   : > { %v2408_v3 = vmax.f32 %v2406_v1, 0.0  ;;  %v2407_v5 = vmax.f32 %v6243_v62, %v2405_v2  ;;  %v5532_v62 = vld [vmem:[%s6777_s5 + $0x38] sm:$0xff]  }
 0x1f3   : > { %2410 = vst.msk [vmem:[#allocation2 + $0x8] sm:$0xff] %vm415_vm2, %v2408_v3  ;;  %v2409_v6 = vmax.f32 %v2407_v5, 0.0 }
 0x1f5   : > { %2411 = vst.msk [vmem:[#allocation2 + $0x10] sm:$0xff] %vm415_vm2, %v2409_v6  ;;  %v4459_v6 = vld [vmem:[%s6780_s8] ss:$0 sm:$0xff] }
 0x1fa   : > { %v2413_v10 = vld [vmem:[#allocation2 + $0x7] sm:$0xff] }
 0x1fb   : > { %v2500_v17 = vld [vmem:[#allocation2 + $0x8] sm:$0xff] }
 0x1fc   : > { %v2414_v8 = vld [vmem:[#allocation2 + $0xf] sm:$0xff] }
 0x1fd   : > { %v2423_v12 = vpack.c.bf16 %v2414_v8, %v2413_v10  ;;  %v2501_v16 = vld [vmem:[#allocation2 + $0x10] sm:$0xff] }
 0x1fe   : > { %v2511_v19 = vpack.c.bf16 %v2501_v16, %v2500_v17  ;;  %v2582_v21 = vld [vmem:[#allocation2 + $0x9] sm:$0xff]  ;;  %v2583_v22 = vld [vmem:[#allocation2 + $0x11] sm:$0xff] }
 0x1ff   : > { %5051 = vmatmul.mubr.msk.bf16.vlgmr.msra.gmra.mrb[24].mxu0 %vm415_vm2, %v2423_v12  ;;  %v2593_v7 = vpack.c.bf16 %v2583_v22, %v2582_v21 }
 0x200   : > { %5055 = vmatpush3.bf16.msra.mxu0 %v5529_v11  ;;  %5062 = vmatprep.mubr.msk.bf16.mxu0 %vm5738_vm0, %v5737_v40 }
 0x201   : > { %5056 = vmatprep.subr.bf16.mxu0 %v5737_v40 }
 0x204   : > { %5057 = vmatpush3.bf16.msra.mxu0 %v5530_v38 }
 0x205   : > { %5058 = vmatprep.subr.bf16.mxu0 %v5737_v40 }
 0x208   : > { %5059 = vmatpush3.bf16.msra.mxu0 %v5531_v41 }
 0x209   : > { %5060 = vmatprep.subr.bf16.mxu0 %v5737_v40 }
 0x20c   : > { %5061 = vmatpush3.bf16.msra.mxu0 %v5532_v62 }
 0x20d   : > { %5066 = vmatprep.subr.bf16.mxu0 %v5737_v40 }
 0x20f   : > { %5063 = vmatmul.mubr.msk.bf16.vlgmr.msra.gmra.mrb[24].mxu0 %vm415_vm2, %v2511_v19 }
 0x210   : > { %5067 = vmatpush3.bf16.msra.mxu0 %v5533_v18  ;;  %5074 = vmatprep.mubr.msk.bf16.mxu0 %vm5738_vm0, %v5737_v40 }
 0x211   : > { %5068 = vmatprep.subr.bf16.mxu0 %v5737_v40 }
 0x214   : > { %5069 = vmatpush3.bf16.msra.mxu0 %v5534_v20 }
 0x215   : > { %5070 = vmatprep.subr.bf16.mxu0 %v5737_v40 }
 0x218   : > { %5071 = vmatpush3.bf16.msra.mxu0 %v5535_v37 }
 0x219   : > { %5072 = vmatprep.subr.bf16.mxu0 %v5737_v40 }
 0x21c   : > { %5073 = vmatpush3.bf16.msra.mxu0 %v5536_v45 }
 0x21d   : > { %5114 = vmatprep.subr.bf16.mxu0 %v5737_v40 }
 0x21f   : > { %5075 = vmatmul.mubr.msk.bf16.vlgmr.msra.gmra.mrb[24].mxu0 %vm415_vm2, %v2593_v7  ;;  %v5553_v7 = vld [vmem:[%s6779_s7 + $0xa0] sm:$0xff]  }
 0x220   : > { %5122 = vmatprep.mubr.msk.bf16.mxu0 %vm5738_vm0, %v5737_v40  ;;  %5115 = vmatpush3.bf16.msra.mxu0 %v5546_v44  ;;  %v5563_v44 = vld [vmem:[%s6779_s7 + $0xe8] sm:$0xff]  }
 0x221   : > { %5116 = vmatprep.subr.bf16.mxu0 %v5737_v40 }
 0x224   : > { %5117 = vmatpush3.bf16.msra.mxu0 %v5548_v34  ;;  %v5565_v34 = vld [vmem:[%s6779_s7 + $0xf0] sm:$0xff]  }
 0x225   : > { %5118 = vmatprep.subr.bf16.mxu0 %v5737_v40 }
 0x228   : > { %5119 = vmatpush3.bf16.msra.mxu0 %v5550_v63  ;;  %v5567_v63 = vld [vmem:[%s6779_s7 + $0xf8] sm:$0xff]  }
 0x229   : > { %5120 = vmatprep.subr.bf16.mxu0 %v5737_v40 }
 0x22c   : > { %5121 = vmatpush3.bf16.msra.mxu0 %v5552_v0 }
 0x22d   : > { %5138 = vmatprep.subr.bf16.mxu0 %v5737_v40 }
 0x2f2   : > { %v2655_v28 = vpop.f32.mrb[24].mxu0 }
 0x2f3   : > { %v5282_v29 = vadd.f32 %v4414_v27, %v2655_v28  ;;  %v5076_v30 = vpop.f32.mrb[25].mxu0  ;;  %v5559_v28 = vld [vmem:[%s6779_s7 + $0xb8] sm:$0xff]  }
 0x2f4   : > { %v2658_v31 = vpop.f32.mrb[26].mxu0 }
 0x2f5   : > { %v2664_v32 = vmax.f32 %v5282_v29, 0.0  ;;  %v5283_v35 = vadd.f32 %v4414_v27, %v2658_v31  ;;  %v5077_v42 = vpop.f32.mrb[27].mxu0  ;;  %v5558_v27 = vld [vmem:[%s6779_s7 + $0x90] sm:$0xff]   ;;  %v5560_v29 = vld [vmem:[%s6779_s7 + $0x98] sm:$0xff]   ;;  %v4486_v31 = vld [vmem:[%s6780_s8 + $0x1] ss:$0 sm:$0xff] }
 0x2f7   : > { %2666 = vst.msk [vmem:[#allocation2 + $0x8] sm:$0xff] %vm415_vm2, %v2664_v32  ;;  %v2665_v43 = vmax.f32 %v5283_v35, 0.0 }
 0x2f9   : > { %2667 = vst.msk [vmem:[#allocation2 + $0x10] sm:$0xff] %vm415_vm2, %v2665_v43 }
 0x2fe   : > { %v2668_v46 = vld [vmem:[#allocation2 + $0x7] sm:$0xff] }
 0x2ff   : > { %v2670_v47 = vld [vmem:[#allocation2 + $0x8] sm:$0xff] }
 0x300   : > { %v2672_v33 = vmax.f32 %v2668_v46, %v2670_v47  ;;  %v2669_v14 = vld [vmem:[#allocation2 + $0xf] sm:$0xff] }
 0x301   : > { %v2671_v15 = vld [vmem:[#allocation2 + $0x10] sm:$0xff] }
 0x302   : > { %v2674_v48 = vld [vmem:[#allocation2 + $0x9] sm:$0xff]  ;;  %v2673_v49 = vmax.f32 %v2669_v14, %v2671_v15  ;;  %v2675_v51 = vld [vmem:[#allocation2 + $0x11] sm:$0xff] }
 0x303   : > { %v6329_v50 = vmax.f32 %v2672_v33, %v2674_v48 }
 0x304   : > { %v6331_v36 = vmax.f32 %v2673_v49, %v2675_v51 }
 0x305   : > { %2678 = vst.msk [vmem:[#allocation2 + $0x8] sm:$0xff] %vm415_vm2, %v6329_v50 }
 0x306   : > { %2679 = vst.msk [vmem:[#allocation2 + $0x10] sm:$0xff] %vm415_vm2, %v6331_v36 }
 0x30c   : > { %v2701_v52 = vld [vmem:[#allocation2 + $0x8] sm:$0xff] }
 0x30d   : > { %v2702_v53 = vld [vmem:[#allocation2 + $0x10] sm:$0xff]  ;;  %v2698_v59 = vld [vmem:[#allocation2 + $0x7] sm:$0xff] }
 0x30e   : > { %v2703_v55 = vpack.c.bf16 %v2702_v53, %v2701_v52  ;;  %v2699_v58 = vld [vmem:[#allocation2 + $0xf] sm:$0xff] }
 0x30f   : > { %v2700_v4 = vpack.c.bf16 %v2699_v58, %v2698_v59 }
 0x310   : > { %5087 = vmatmul.mubr.msk.bf16.vlgmr.msra.gmra.mrb[24].mxu1 %vm415_vm2, %v2703_v55 }
 0x311   : > { %5091 = vmatpush3.bf16.msra.mxu1 %v5541_v54  ;;  %5098 = vmatprep.mubr.msk.bf16.mxu1 %vm5738_vm0, %v5737_v40 }
 0x312   : > { %5092 = vmatprep.subr.bf16.mxu1 %v5737_v40 }
 0x315   : > { %5093 = vmatpush3.bf16.msra.mxu1 %v5542_v56 }
 0x316   : > { %5094 = vmatprep.subr.bf16.mxu1 %v5737_v40 }
 0x319   : > { %5095 = vmatpush3.bf16.msra.mxu1 %v5543_v39 }
 0x31a   : > { %5096 = vmatprep.subr.bf16.mxu1 %v5737_v40 }
 0x31d   : > { %5097 = vmatpush3.bf16.msra.mxu1 %v5544_v57 }
 0x31e   : > { %5102 = vmatprep.subr.bf16.mxu1 %v5737_v40 }
 0x320   : > { %5099 = vmatmul.mubr.msk.bf16.vlgmr.msra.gmra.mrb[28].mxu1 %vm415_vm2, %v2700_v4 }
 0x321   : > { %5110 = vmatprep.mubr.msk.bf16.mxu1 %vm5738_vm0, %v5737_v40  ;;  %5103 = vmatpush3.bf16.msra.mxu1 %v5545_v60  ;;  %v5562_v60 = vld [vmem:[%s6779_s7 + $0xc0] sm:$0xff]  }
 0x322   : > { %5104 = vmatprep.subr.bf16.mxu1 %v5737_v40 }
 0x325   : > { %5105 = vmatpush3.bf16.msra.mxu1 %v5547_v9  ;;  %v5564_v9 = vld [vmem:[%s6779_s7 + $0xc8] sm:$0xff]  }
 0x326   : > { %5106 = vmatprep.subr.bf16.mxu1 %v5737_v40 }
 0x329   : > { %5107 = vmatpush3.bf16.msra.mxu1 %v5549_v61  ;;  %v5566_v61 = vld [vmem:[%s6779_s7 + $0xd0] sm:$0xff]  }
 0x32a   : > { %5108 = vmatprep.subr.bf16.mxu1 %v5737_v40 }
 0x32d   : > { %5109 = vmatpush3.bf16.msra.mxu1 %v5551_v13  ;;  %v5568_v13 = vld [vmem:[%s6779_s7 + $0xd8] sm:$0xff]  }
 0x32e   : > { %5126 = vmatprep.subr.bf16.mxu1 %v5737_v40 }
 0x3e3   : > { %v2765_v1 = vpop.f32.mrb[24].mxu1 }
 0x3e4   : > { %v5088_v2 = vpop.f32.mrb[25].mxu1 }
 0x3e5   : > { %v2768_v3 = vpop.f32.mrb[26].mxu1 }
 0x3e6   : > { %v5089_v5 = vpop.f32.mrb[27].mxu1 }
 0x3f3   : > { %v2833_v8 = vpop.f32.mrb[28].mxu1 }
 0x3f4   : > { %v2834_v10 = vadd.f32 %v2833_v8, %v2765_v1  ;;  %v5100_v11 = vpop.f32.mrb[29].mxu1  ;;  %v4513_v1 = vld [vmem:[%s6780_s8 + $0x2] ss:$0 sm:$0xff] }
 0x3f5   : > { %v2836_v12 = vpop.f32.mrb[30].mxu1 }
 0x3f6   : > { %v2844_v38 = vadd.f32 %v4459_v6, %v2834_v10  ;;  %v2837_v41 = vadd.f32 %v2836_v12, %v2768_v3  ;;  %v5101_v62 = vpop.f32.mrb[31].mxu1 }
 0x3f8   : > { %v2846_v16 = vmax.f32 %v2844_v38, 0.0  ;;  %v2845_v17 = vadd.f32 %v4459_v6, %v2837_v41 }
 0x3fa   : > { %2848 = vst.msk [vmem:[#allocation2 + $0x8] sm:$0xff] %vm415_vm2, %v2846_v16  ;;  %v2847_v18 = vmax.f32 %v2845_v17, 0.0 }
 0x3fc   : > { %2849 = vst.msk [vmem:[#allocation2 + $0x10] sm:$0xff] %vm415_vm2, %v2847_v18 }
 0x401   : > { %v2872_v19 = vld [vmem:[#allocation2 + $0x8] sm:$0xff] }
 0x402   : > { %v2869_v37 = vld [vmem:[#allocation2 + $0x7] sm:$0xff] }
 0x403   : > { %v2873_v20 = vld [vmem:[#allocation2 + $0x10] sm:$0xff] }
 0x404   : > { %v2870_v45 = vld [vmem:[#allocation2 + $0xf] sm:$0xff]  ;;  %v2874_v21 = vpack.c.bf16 %v2873_v20, %v2872_v19 }
 0x405   : > { %v2871_v22 = vpack.c.bf16 %v2870_v45, %v2869_v37 }
 0x406   : > { %5111 = vmatmul.mubr.msk.bf16.vlgmr.msra.gmra.mrb[32].mxu1 %vm415_vm2, %v2874_v21 }
 0x407   : > { %5123 = vmatmul.mubr.msk.bf16.vlgmr.msra.gmra.mrb[28].mxu0 %vm415_vm2, %v2871_v22  ;;  %5134 = vmatprep.mubr.msk.bf16.mxu1 %vm5738_vm0, %v5737_v40  ;;  %v5569_v22 = vld [vmem:[%s6779_s7 + $0x120] sm:$0xff]  }
 0x408   : > { %5146 = vmatprep.mubr.msk.bf16.mxu0 %vm5738_vm0, %v5737_v40  ;;  %5127 = vmatpush3.bf16.msra.mxu1 %v5553_v7  ;;  %v5570_v7 = vld [vmem:[%s6779_s7 + $0x100] sm:$0xff]  }
 0x409   : > { %5139 = vmatpush3.bf16.msra.mxu0 %v5554_v23  ;;  %5128 = vmatprep.subr.bf16.mxu1 %v5737_v40  ;;  %v5571_v23 = vld [vmem:[%s6779_s7 + $0x128] sm:$0xff]  }
 0x40a   : > { %5140 = vmatprep.subr.bf16.mxu0 %v5737_v40 }
 0x40c   : > { %5129 = vmatpush3.bf16.msra.mxu1 %v5555_v24  ;;  %v5572_v24 = vld [vmem:[%s6779_s7 + $0x108] sm:$0xff]  }
 0x40d   : > { %5141 = vmatpush3.bf16.msra.mxu0 %v5556_v25  ;;  %5130 = vmatprep.subr.bf16.mxu1 %v5737_v40  ;;  %v5573_v25 = vld [vmem:[%s6779_s7 + $0x130] sm:$0xff]  }
 0x40e   : > { %5142 = vmatprep.subr.bf16.mxu0 %v5737_v40 }
 0x410   : > { %5131 = vmatpush3.bf16.msra.mxu1 %v5557_v26  ;;  %v5574_v26 = vld [vmem:[%s6779_s7 + $0x110] sm:$0xff]  }
 0x411   : > { %5143 = vmatpush3.bf16.msra.mxu0 %v5558_v27  ;;  %5132 = vmatprep.subr.bf16.mxu1 %v5737_v40  ;;  %v5575_v27 = vld [vmem:[%s6779_s7 + $0x138] sm:$0xff]  }
 0x412   : > { %5144 = vmatprep.subr.bf16.mxu0 %v5737_v40 }
 0x414   : > { %5133 = vmatpush3.bf16.msra.mxu1 %v5559_v28  ;;  %v5576_v28 = vld [vmem:[%s6779_s7 + $0x118] sm:$0xff]  }
 0x415   : > { %5145 = vmatpush3.bf16.msra.mxu0 %v5560_v29  ;;  %5150 = vmatprep.subr.bf16.mxu1 %v5737_v40 }
 0x416   : > { %5162 = vmatprep.subr.bf16.mxu0 %v5737_v40 }
 0x4d9   : > { %v2936_v30 = vpop.f32.mrb[32].mxu1 }
 0x4da   : > { %v3004_v32 = vpop.f32.mrb[28].mxu0  ;;  %v5112_v42 = vpop.f32.mrb[33].mxu1 }
 0x4db   : > { %v3005_v35 = vadd.f32 %v3004_v32, %v2936_v30  ;;  %v5124_v43 = vpop.f32.mrb[29].mxu0  ;;  %v2939_v46 = vpop.f32.mrb[34].mxu1  ;;  %v4540_v30 = vld [vmem:[%s6780_s8 + $0x3] ss:$0 sm:$0xff] }
 0x4dc   : > { %v3007_v47 = vpop.f32.mrb[30].mxu0  ;;  %v5113_v15 = vpop.f32.mrb[35].mxu1 }
 0x4dd   : > { %v3015_v33 = vadd.f32 %v4486_v31, %v3005_v35  ;;  %v3008_v14 = vadd.f32 %v3007_v47, %v2939_v46  ;;  %v5125_v48 = vpop.f32.mrb[31].mxu0 }
 0x4df   : > { %v3017_v49 = vmax.f32 %v3015_v33, 0.0  ;;  %v3016_v51 = vadd.f32 %v4486_v31, %v3008_v14 }
 0x4e1   : > { %v6438_v52 = vadd.f32 %v3017_v49, %v6329_v50  ;;  %v3018_v53 = vmax.f32 %v3016_v51, 0.0 }
 0x4e3   : > { %v3021_v54 = vmax.f32 %v6438_v52, 0.0  ;;  %v6442_v55 = vadd.f32 %v3018_v53, %v6331_v36  ;;  %v5561_v36 = vld [vmem:[%s6779_s7 + $0xe0] sm:$0xff]  }
 0x4e5   : > { %3023 = vst.msk [vmem:[#allocation2 + $0x8] sm:$0xff] %vm415_vm2, %v3021_v54  ;;  %v3022_v56 = vmax.f32 %v6442_v55, 0.0  ;;  %v5577_v55 = vld [vmem:[%s6779_s7 + $0x160] sm:$0xff]  }
 0x4e7   : > { %3024 = vst.msk [vmem:[#allocation2 + $0x10] sm:$0xff] %vm415_vm2, %v3022_v56 }
 0x4ec   : > { %v3047_v39 = vld [vmem:[#allocation2 + $0x8] sm:$0xff] }
 0x4ed   : > { %v3044_v50 = vld [vmem:[#allocation2 + $0x6] sm:$0xff] }
 0x4ee   : > { %v3048_v57 = vld [vmem:[#allocation2 + $0x10] sm:$0xff] }
 0x4ef   : > { %v3045_v58 = vld [vmem:[#allocation2 + $0xe] sm:$0xff]  ;;  %v3049_v59 = vpack.c.bf16 %v3048_v57, %v3047_v39 }
 0x4f0   : > { %v3046_v4 = vpack.c.bf16 %v3045_v58, %v3044_v50 }
 0x4f1   : > { %5135 = vmatmul.mubr.msk.bf16.vlgmr.msra.gmra.mrb[36].mxu1 %vm415_vm2, %v3049_v59 }
 0x4f2   : > { %5147 = vmatmul.mubr.msk.bf16.vlgmr.msra.gmra.mrb[32].mxu0 %vm415_vm2, %v3046_v4  ;;  %5158 = vmatprep.mubr.msk.bf16.mxu1 %vm5738_vm0, %v5737_v40 }
 0x4f3   : > { %5170 = vmatprep.mubr.msk.bf16.mxu0 %vm5738_vm0, %v5737_v40  ;;  %5151 = vmatpush3.bf16.msra.mxu1 %v5561_v36 }
 0x4f4   : > { %5163 = vmatpush3.bf16.msra.mxu0 %v5562_v60  ;;  %5152 = vmatprep.subr.bf16.mxu1 %v5737_v40  ;;  %v5579_v60 = vld [vmem:[%s6779_s7 + $0x168] sm:$0xff]  }
 0x4f5   : > { %5164 = vmatprep.subr.bf16.mxu0 %v5737_v40 }
 0x4f7   : > { %5153 = vmatpush3.bf16.msra.mxu1 %v5563_v44  ;;  %v5580_v44 = vld [vmem:[%s6779_s7 + $0x148] sm:$0xff]  }
 0x4f8   : > { %5165 = vmatpush3.bf16.msra.mxu0 %v5564_v9  ;;  %5154 = vmatprep.subr.bf16.mxu1 %v5737_v40  ;;  %v5581_v9 = vld [vmem:[%s6779_s7 + $0x170] sm:$0xff]  }
 0x4f9   : > { %5166 = vmatprep.subr.bf16.mxu0 %v5737_v40 }
 0x4fb   : > { %5155 = vmatpush3.bf16.msra.mxu1 %v5565_v34  ;;  %v5582_v34 = vld [vmem:[%s6779_s7 + $0x150] sm:$0xff]  }
 0x4fc   : > { %5167 = vmatpush3.bf16.msra.mxu0 %v5566_v61  ;;  %5156 = vmatprep.subr.bf16.mxu1 %v5737_v40  ;;  %v5583_v61 = vld [vmem:[%s6779_s7 + $0x178] sm:$0xff]  }
 0x4fd   : > { %5168 = vmatprep.subr.bf16.mxu0 %v5737_v40 }
 0x4ff   : > { %5157 = vmatpush3.bf16.msra.mxu1 %v5567_v63  ;;  %v5584_v63 = vld [vmem:[%s6779_s7 + $0x158] sm:$0xff]  }
 0x500   : > { %5169 = vmatpush3.bf16.msra.mxu0 %v5568_v13  ;;  %5174 = vmatprep.subr.bf16.mxu1 %v5737_v40 }
 0x501   : > { %5186 = vmatprep.subr.bf16.mxu0 %v5737_v40 }
 0x5c4   : > { %v3111_v0 = vpop.f32.mrb[36].mxu1 }
 0x5c5   : > { %v3179_v2 = vpop.f32.mrb[32].mxu0  ;;  %v5136_v5 = vpop.f32.mrb[37].mxu1 }
 0x5c6   : > { %v3180_v3 = vadd.f32 %v3179_v2, %v3111_v0  ;;  %v5148_v6 = vpop.f32.mrb[33].mxu0  ;;  %v3114_v8 = vpop.f32.mrb[38].mxu1  ;;  %v4567_v0 = vld [vmem:[%s6780_s8 + $0x4] ss:$0 sm:$0xff] }
 0x5c7   : > { %v3182_v10 = vpop.f32.mrb[34].mxu0  ;;  %v5137_v38 = vpop.f32.mrb[39].mxu1 }
 0x5c8   : > { %v3190_v11 = vadd.f32 %v4513_v1, %v3180_v3  ;;  %v3183_v12 = vadd.f32 %v3182_v10, %v3114_v8  ;;  %v5149_v41 = vpop.f32.mrb[35].mxu0 }
 0x5ca   : > { %v3192_v62 = vmax.f32 %v3190_v11, 0.0  ;;  %v3191_v16 = vadd.f32 %v4513_v1, %v3183_v12 }
 0x5cc   : > { %3194 = vst.msk [vmem:[#allocation2 + $0x8] sm:$0xff] %vm415_vm2, %v3192_v62  ;;  %v3193_v17 = vmax.f32 %v3191_v16, 0.0 }
 0x5ce   : > { %3195 = vst.msk [vmem:[#allocation2 + $0x10] sm:$0xff] %vm415_vm2, %v3193_v17 }
 0x5d3   : > { %v3218_v18 = vld [vmem:[#allocation2 + $0x8] sm:$0xff] }
 0x5d4   : > { %v3215_v20 = vld [vmem:[#allocation2 + $0x6] sm:$0xff] }
 0x5d5   : > { %v3219_v19 = vld [vmem:[#allocation2 + $0x10] sm:$0xff] }
 0x5d6   : > { %v3216_v37 = vld [vmem:[#allocation2 + $0xe] sm:$0xff]  ;;  %v3220_v45 = vpack.c.bf16 %v3219_v19, %v3218_v18 }
 0x5d7   : > { %v3217_v21 = vpack.c.bf16 %v3216_v37, %v3215_v20 }
 0x5d8   : > { %5159 = vmatmul.mubr.msk.bf16.vlgmr.msra.gmra.mrb[40].mxu1 %vm415_vm2, %v3220_v45 }
 0x5d9   : > { %5171 = vmatmul.mubr.msk.bf16.vlgmr.msra.gmra.mrb[36].mxu0 %vm415_vm2, %v3217_v21  ;;  %5182 = vmatprep.mubr.msk.bf16.mxu1 %vm5738_vm0, %v5737_v40  ;;  %v5585_v21 = vld [vmem:[%s6779_s7 + $0x180] sm:$0xff]  }
 0x5da   : > { %5194 = vmatprep.mubr.msk.bf16.mxu0 %vm5738_vm0, %v5737_v40  ;;  %5175 = vmatpush3.bf16.msra.mxu1 %v5569_v22  ;;  %v5586_v22 = vld [vmem:[%s6779_s7 + $0x1a0] sm:$0xff]  }
 0x5db   : > { %5187 = vmatpush3.bf16.msra.mxu0 %v5570_v7  ;;  %5176 = vmatprep.subr.bf16.mxu1 %v5737_v40  ;;  %v5587_v7 = vld [vmem:[%s6779_s7 + $0x188] sm:$0xff]  }
 0x5dc   : > { %5188 = vmatprep.subr.bf16.mxu0 %v5737_v40 }
 0x5de   : > { %5177 = vmatpush3.bf16.msra.mxu1 %v5571_v23  ;;  %v5588_v23 = vld [vmem:[%s6779_s7 + $0x1a8] sm:$0xff]  }
 0x5df   : > { %5189 = vmatpush3.bf16.msra.mxu0 %v5572_v24  ;;  %5178 = vmatprep.subr.bf16.mxu1 %v5737_v40  ;;  %v5589_v24 = vld [vmem:[%s6779_s7 + $0x190] sm:$0xff]  }
 0x5e0   : > { %5190 = vmatprep.subr.bf16.mxu0 %v5737_v40 }
 0x5e2   : > { %5179 = vmatpush3.bf16.msra.mxu1 %v5573_v25  ;;  %v5590_v25 = vld [vmem:[%s6779_s7 + $0x1b0] sm:$0xff]  }
 0x5e3   : > { %5191 = vmatpush3.bf16.msra.mxu0 %v5574_v26  ;;  %5180 = vmatprep.subr.bf16.mxu1 %v5737_v40  ;;  %v5591_v26 = vld [vmem:[%s6779_s7 + $0x198] sm:$0xff]  }
 0x5e4   : > { %5192 = vmatprep.subr.bf16.mxu0 %v5737_v40 }
 0x5e6   : > { %5181 = vmatpush3.bf16.msra.mxu1 %v5575_v27  ;;  %v5592_v27 = vld [vmem:[%s6779_s7 + $0x1b8] sm:$0xff]  }
 0x5e7   : > { %5193 = vmatpush3.bf16.msra.mxu0 %v5576_v28  ;;  %5198 = vmatprep.subr.bf16.mxu1 %v5737_v40 }
 0x5e8   : > { %5210 = vmatprep.subr.bf16.mxu0 %v5737_v40 }
 0x6ab   : > { %v3282_v29 = vpop.f32.mrb[40].mxu1 }
 0x6ac   : > { %v3350_v31 = vpop.f32.mrb[36].mxu0  ;;  %v5160_v35 = vpop.f32.mrb[41].mxu1 }
 0x6ad   : > { %v3351_v32 = vadd.f32 %v3350_v31, %v3282_v29  ;;  %v5172_v42 = vpop.f32.mrb[37].mxu0  ;;  %v3285_v43 = vpop.f32.mrb[42].mxu1  ;;  %v4594_v29 = vld [vmem:[%s6780_s8 + $0x5] ss:$0 sm:$0xff] }
 0x6ae   : > { %v3353_v46 = vpop.f32.mrb[38].mxu0  ;;  %v5161_v14 = vpop.f32.mrb[43].mxu1 }
 0x6af   : > { %v3361_v47 = vadd.f32 %v4540_v30, %v3351_v32  ;;  %v3354_v33 = vadd.f32 %v3353_v46, %v3285_v43  ;;  %v5173_v15 = vpop.f32.mrb[39].mxu0 }
 0x6b1   : > { %v3363_v48 = vmax.f32 %v3361_v47, 0.0  ;;  %v3362_v49 = vadd.f32 %v4540_v30, %v3354_v33 }
 0x6b3   : > { %v6537_v51 = vadd.f32 %v3363_v48, %v3021_v54  ;;  %v3364_v53 = vmax.f32 %v3362_v49, 0.0 }
 0x6b5   : > { %v3367_v39 = vmax.f32 %v6537_v51, 0.0  ;;  %v6542_v57 = vadd.f32 %v3364_v53, %v3022_v56  ;;  %v5578_v56 = vld [vmem:[%s6779_s7 + $0x140] sm:$0xff]  }
 0x6b6   : > { %v3736_v51 = vld [vmem:[#allocation2] sm:$0xff] }
 0x6b7   : > { %3369 = vst.msk [vmem:[#allocation2 + $0x8] sm:$0xff] %vm415_vm2, %v3367_v39  ;;  %v3368_v50 = vmax.f32 %v6542_v57, 0.0  ;;  %v5593_v57 = vld [vmem:[%s6779_s7 + $0x1c0] sm:$0xff]  }
 0x6b9   : > { %3370 = vst.msk [vmem:[#allocation2 + $0x10] sm:$0xff] %vm415_vm2, %v3368_v50 }
 0x6be   : > { %v3393_v52 = vld [vmem:[#allocation2 + $0x8] sm:$0xff] }
 0x6bf   : > { %v3390_v58 = vld [vmem:[#allocation2 + $0x4] sm:$0xff] }
 0x6c0   : > { %v3394_v54 = vld [vmem:[#allocation2 + $0x10] sm:$0xff] }
 0x6c1   : > { %v3391_v59 = vld [vmem:[#allocation2 + $0xc] sm:$0xff]  ;;  %v3395_v4 = vpack.c.bf16 %v3394_v54, %v3393_v52 }
 0x6c2   : > { %v3392_v36 = vpack.c.bf16 %v3391_v59, %v3390_v58 }
 0x6c3   : > { %5183 = vmatmul.mubr.msk.bf16.vlgmr.msra.gmra.mrb[44].mxu1 %vm415_vm2, %v3395_v4 }
 0x6c4   : > { %5195 = vmatmul.mubr.msk.bf16.vlgmr.msra.gmra.mrb[40].mxu0 %vm415_vm2, %v3392_v36  ;;  %5206 = vmatprep.mubr.msk.bf16.mxu1 %vm5738_vm0, %v5737_v40 }
 0x6c5   : > { %5218 = vmatprep.mubr.msk.bf16.mxu0 %vm5738_vm0, %v5737_v40  ;;  %5199 = vmatpush3.bf16.msra.mxu1 %v5577_v55  ;;  %v5595_v55 = vld [vmem:[%s6779_s7 + $0x1c8] sm:$0xff]  }
 0x6c6   : > { %5211 = vmatpush3.bf16.msra.mxu0 %v5578_v56  ;;  %5200 = vmatprep.subr.bf16.mxu1 %v5737_v40  ;;  %v5596_v56 = vld [vmem:[%s6779_s7 + $0x1e8] sm:$0xff]  }
 0x6c7   : > { %5212 = vmatprep.subr.bf16.mxu0 %v5737_v40 }
 0x6c9   : > { %5201 = vmatpush3.bf16.msra.mxu1 %v5579_v60  ;;  %v5597_v60 = vld [vmem:[%s6779_s7 + $0x1d0] sm:$0xff]  }
 0x6ca   : > { %5213 = vmatpush3.bf16.msra.mxu0 %v5580_v44  ;;  %5202 = vmatprep.subr.bf16.mxu1 %v5737_v40  ;;  %v5598_v44 = vld [vmem:[%s6779_s7 + $0x1f0] sm:$0xff]  }
 0x6cb   : > { %5214 = vmatprep.subr.bf16.mxu0 %v5737_v40 }
 0x6cd   : > { %5203 = vmatpush3.bf16.msra.mxu1 %v5581_v9  ;;  %v5599_v9 = vld [vmem:[%s6779_s7 + $0x1d8] sm:$0xff]  }
 0x6ce   : > { %5215 = vmatpush3.bf16.msra.mxu0 %v5582_v34  ;;  %5204 = vmatprep.subr.bf16.mxu1 %v5737_v40  ;;  %v5600_v34 = vld [vmem:[%s6779_s7 + $0x1f8] sm:$0xff]  }
 0x6cf   : > { %5216 = vmatprep.subr.bf16.mxu0 %v5737_v40 }
 0x6d1   : > { %5205 = vmatpush3.bf16.msra.mxu1 %v5583_v61 }
 0x6d2   : > { %5217 = vmatpush3.bf16.msra.mxu0 %v5584_v63  ;;  %5222 = vmatprep.subr.bf16.mxu1 %v5737_v40 }
 0x6d3   : > { %5234 = vmatprep.subr.bf16.mxu0 %v5737_v40 }
 0x796   : > { %v3457_v13 = vpop.f32.mrb[44].mxu1 }
 0x797   : > { %v3525_v1 = vpop.f32.mrb[40].mxu0  ;;  %v5184_v3 = vpop.f32.mrb[45].mxu1 }
 0x798   : > { %v3526_v2 = vadd.f32 %v3525_v1, %v3457_v13  ;;  %v5196_v5 = vpop.f32.mrb[41].mxu0  ;;  %v3460_v6 = vpop.f32.mrb[46].mxu1  ;;  %v4621_v13 = vld [vmem:[%s6780_s8 + $0x6] ss:$0 sm:$0xff] }
 0x799   : > { %v3528_v8 = vpop.f32.mrb[42].mxu0  ;;  %v5185_v12 = vpop.f32.mrb[47].mxu1 }
 0x79a   : > { %v3536_v10 = vadd.f32 %v4567_v0, %v3526_v2  ;;  %v3529_v11 = vadd.f32 %v3528_v8, %v3460_v6  ;;  %v5197_v38 = vpop.f32.mrb[43].mxu0 }
 0x79c   : > { %v3538_v41 = vmax.f32 %v3536_v10, 0.0  ;;  %v3537_v62 = vadd.f32 %v4567_v0, %v3529_v11 }
 0x79e   : > { %3540 = vst.msk [vmem:[#allocation2 + $0x8] sm:$0xff] %vm415_vm2, %v3538_v41  ;;  %v3539_v16 = vmax.f32 %v3537_v62, 0.0 }
 0x7a0   : > { %3541 = vst.msk [vmem:[#allocation2 + $0x10] sm:$0xff] %vm415_vm2, %v3539_v16 }
 0x7a5   : > { %v3564_v17 = vld [vmem:[#allocation2 + $0x8] sm:$0xff] }
 0x7a6   : > { %v3561_v19 = vld [vmem:[#allocation2 + $0x4] sm:$0xff] }
 0x7a7   : > { %v3565_v18 = vld [vmem:[#allocation2 + $0x10] sm:$0xff] }
 0x7a8   : > { %v3562_v20 = vld [vmem:[#allocation2 + $0xc] sm:$0xff]  ;;  %v3566_v37 = vpack.c.bf16 %v3565_v18, %v3564_v17 }
 0x7a9   : > { %v3563_v45 = vpack.c.bf16 %v3562_v20, %v3561_v19  ;;  %v5601_v19 = vld [vmem:[%s6781_s9] sm:$0xff]   ;;  %v5602_v20 = vld [vmem:[%s6781_s9 + $0x8] sm:$0xff]  }
 0x7aa   : > { %5207 = vmatmul.mubr.msk.bf16.vlgmr.msra.gmra.mrb[48].mxu1 %vm415_vm2, %v3566_v37  ;;  %v5603_v37 = vld [vmem:[%s6781_s9 + $0x10] sm:$0xff]  }
 0x7ab   : > { %5219 = vmatmul.mubr.msk.bf16.vlgmr.msra.gmra.mrb[44].mxu0 %vm415_vm2, %v3563_v45  ;;  %5230 = vmatprep.mubr.msk.bf16.mxu1 %vm5738_vm0, %v5737_v40  ;;  %v5604_v45 = vld [vmem:[%s6781_s9 + $0x18] sm:$0xff]  }
 0x7ac   : > { %5242 = vmatprep.mubr.msk.bf16.mxu0 %vm5738_vm0, %v5737_v40  ;;  %5235 = vmatpush3.bf16.msra.mxu0 %v5585_v21 }
 0x7ad   : > { %5236 = vmatprep.subr.bf16.mxu0 %v5737_v40  ;;  %5223 = vmatpush3.bf16.msra.mxu1 %v5586_v22 }
 0x7ae   : > { %5224 = vmatprep.subr.bf16.mxu1 %v5737_v40 }
 0x7b0   : > { %5237 = vmatpush3.bf16.msra.mxu0 %v5587_v7  ;;  %v4648_v7 = vld [vmem:[%s6780_s8 + $0x7] ss:$0 sm:$0xff] }
 0x7b1   : > { %5238 = vmatprep.subr.bf16.mxu0 %v5737_v40  ;;  %5225 = vmatpush3.bf16.msra.mxu1 %v5588_v23 }
 0x7b2   : > { %5226 = vmatprep.subr.bf16.mxu1 %v5737_v40 }
 0x7b4   : > { %5239 = vmatpush3.bf16.msra.mxu0 %v5589_v24 }
 0x7b5   : > { %5240 = vmatprep.subr.bf16.mxu0 %v5737_v40  ;;  %5227 = vmatpush3.bf16.msra.mxu1 %v5590_v25 }
 0x7b6   : > { %5228 = vmatprep.subr.bf16.mxu1 %v5737_v40 }
 0x7b8   : > { %5241 = vmatpush3.bf16.msra.mxu0 %v5591_v26 }
 0x7b9   : > { %5258 = vmatprep.subr.bf16.mxu0 %v5737_v40  ;;  %5229 = vmatpush3.bf16.msra.mxu1 %v5592_v27 }
 0x7ba   : > { %5246 = vmatprep.subr.bf16.mxu1 %v5737_v40 }
 0x87d   : > { %v3628_v28 = vpop.f32.mrb[48].mxu1 }
 0x87e   : > { %v3696_v30 = vpop.f32.mrb[44].mxu0  ;;  %v5208_v32 = vpop.f32.mrb[49].mxu1 }
 0x87f   : > { %v3697_v31 = vadd.f32 %v3696_v30, %v3628_v28  ;;  %v5220_v35 = vpop.f32.mrb[45].mxu0  ;;  %v3631_v42 = vpop.f32.mrb[50].mxu1 }
 0x880   : > { %v3699_v43 = vpop.f32.mrb[46].mxu0  ;;  %v5209_v33 = vpop.f32.mrb[51].mxu1 }
 0x881   : > { %v3707_v46 = vadd.f32 %v4594_v29, %v3697_v31  ;;  %v3700_v47 = vadd.f32 %v3699_v43, %v3631_v42  ;;  %v5221_v14 = vpop.f32.mrb[47].mxu0 }
 0x883   : > { %v3709_v15 = vmax.f32 %v3707_v46, 0.0  ;;  %v3708_v48 = vadd.f32 %v4594_v29, %v3700_v47 }
 0x885   : > { %v6637_v49 = vadd.f32 %v3709_v15, %v3367_v39  ;;  %v3710_v53 = vmax.f32 %v3708_v48, 0.0  ;;  %v4071_v15 = vld [vmem:[%s6782_s10] sm:$0x1] }
 0x887   : > { %v3713_v52 = vmax.f32 %v6637_v49, 0.0  ;;  %v6642_v54 = vadd.f32 %v3710_v53, %v3368_v50  ;;  %v5594_v50 = vld [vmem:[%s6779_s7 + $0x1e0] sm:$0xff]  }
 0x889   : > { %3715 = vst.msk [vmem:[#allocation2 + $0x8] sm:$0xff] %vm415_vm2, %v3713_v52  ;;  %v3714_v58 = vmax.f32 %v6642_v54, 0.0 }
 0x88b   : > { %3716 = vst.msk [vmem:[#allocation2 + $0x10] sm:$0xff] %vm415_vm2, %v3714_v58 }
 0x890   : > { %v3737_v39 = vld [vmem:[#allocation2 + $0x8] sm:$0xff] }
 0x891   : > { %v3738_v59 = vpack.c.bf16 %v3737_v39, %v3736_v51 }
 0x892   : > { %v3739_v4 = vld [vmem:[#allocation2 + $0x10] sm:$0xff] }
 0x893   : > { %5243 = vmatmul.mubr.msk.bf16.vlgmr.msra.gmra.mrb[48].mxu0 %vm415_vm2, %v3738_v59  ;;  %v3740_v36 = vpack.c.bf16 %v3739_v4, %v3737_v39 }
 0x894   : > { %5266 = vmatprep.mubr.msk.bf16.mxu0 %vm5738_vm0, %v5737_v40  ;;  %5259 = vmatpush3.bf16.msra.mxu0 %v5593_v57 }
 0x895   : > { %5231 = vmatmul.mubr.msk.bf16.vlgmr.msra.gmra.mrb[52].mxu1 %vm415_vm2, %v3740_v36  ;;  %5260 = vmatprep.subr.bf16.mxu0 %v5737_v40 }
 0x896   : > { %5254 = vmatprep.mubr.msk.bf16.mxu1 %vm5738_vm0, %v5737_v40  ;;  %5247 = vmatpush3.bf16.msra.mxu1 %v5594_v50 }
 0x897   : > { %5248 = vmatprep.subr.bf16.mxu1 %v5737_v40 }
 0x898   : > { %5261 = vmatpush3.bf16.msra.mxu0 %v5595_v55 }
 0x899   : > { %5262 = vmatprep.subr.bf16.mxu0 %v5737_v40 }
 0x89a   : > { %5249 = vmatpush3.bf16.msra.mxu1 %v5596_v56 }
 0x89b   : > { %5250 = vmatprep.subr.bf16.mxu1 %v5737_v40 }
 0x89c   : > { %5263 = vmatpush3.bf16.msra.mxu0 %v5597_v60 }
 0x89d   : > { %5264 = vmatprep.subr.bf16.mxu0 %v5737_v40 }
 0x89e   : > { %5251 = vmatpush3.bf16.msra.mxu1 %v5598_v44 }
 0x89f   : > { %5252 = vmatprep.subr.bf16.mxu1 %v5737_v40 }
 0x8a0   : > { %5265 = vmatpush3.bf16.msra.mxu0 %v5599_v9 }
 0x8a2   : > { %5253 = vmatpush3.bf16.msra.mxu1 %v5600_v34 }
 0x8a3   : > { %5270 = vmatprep.subr.bf16.mxu1 %v5737_v40 }
 0x966   : > { %v3870_v61 = vpop.f32.mrb[48].mxu0 }
 0x967   : > { %v5244_v63 = vpop.f32.mrb[49].mxu0 }
 0x968   : > { %v3802_v0 = vpop.f32.mrb[52].mxu1  ;;  %v3873_v1 = vpop.f32.mrb[50].mxu0 }
 0x969   : > { %v3871_v2 = vadd.f32 %v3870_v61, %v3802_v0  ;;  %v5232_v3 = vpop.f32.mrb[53].mxu1  ;;  %v5245_v5 = vpop.f32.mrb[51].mxu0 }
 0x96a   : > { %v3805_v6 = vpop.f32.mrb[54].mxu1 }
 0x96b   : > { %v3881_v8 = vadd.f32 %v4621_v13, %v3871_v2  ;;  %v3874_v10 = vadd.f32 %v3873_v1, %v3805_v6  ;;  %v5233_v11 = vpop.f32.mrb[55].mxu1 }
 0x96d   : > { %v3883_v12 = vmax.f32 %v3881_v8, 0.0  ;;  %v3882_v38 = vadd.f32 %v4621_v13, %v3874_v10 }
 0x96f   : > { %3885 = vst.msk [vmem:[#allocation2 + $0x8] sm:$0xff] %vm415_vm2, %v3883_v12  ;;  %v3884_v41 = vmax.f32 %v3882_v38, 0.0 }
 0x971   : > { %3886 = vst.msk [vmem:[#allocation2 + $0x10] sm:$0xff] %vm415_vm2, %v3884_v41 }
 0x976   : > { %v3907_v62 = vld [vmem:[#allocation2 + $0x8] sm:$0xff] }
 0x977   : > { %v3908_v16 = vpack.c.bf16 %v3907_v62, %v3736_v51 }
 0x978   : > { %v3909_v17 = vld [vmem:[#allocation2 + $0x10] sm:$0xff] }
 0x979   : > { %5267 = vmatmul.mubr.msk.bf16.vlgmr.msra.gmra.mrb[52].mxu0 %vm415_vm2, %v3908_v16  ;;  %v3910_v18 = vpack.c.bf16 %v3909_v17, %v3907_v62 }
 0x97b   : > { %5255 = vmatmul.mubr.msk.bf16.vlgmr.msra.gmra.mrb[56].mxu1 %vm415_vm2, %v3910_v18 }
 0x97c   : > { %5278 = vmatprep.mubr.msk.bf16.mxu1 %vm5738_vm0, %v5737_v40  ;;  %5271 = vmatpush3.bf16.msra.mxu1 %v5601_v19 }
 0x97d   : > { %5272 = vmatprep.subr.bf16.mxu1 %v5737_v40 }
 0x980   : > { %5273 = vmatpush3.bf16.msra.mxu1 %v5602_v20 }
 0x981   : > { %5274 = vmatprep.subr.bf16.mxu1 %v5737_v40 }
 0x984   : > { %5275 = vmatpush3.bf16.msra.mxu1 %v5603_v37 }
 0x985   : > { %5276 = vmatprep.subr.bf16.mxu1 %v5737_v40 }
 0x988   : > { %5277 = vmatpush3.bf16.msra.mxu1 %v5604_v45 }
 0xa4c   : > { %v4040_v21 = vpop.f32.mrb[52].mxu0 }
 0xa4d   : > { %v5268_v22 = vpop.f32.mrb[53].mxu0 }
 0xa4e   : > { %v3972_v23 = vpop.f32.mrb[56].mxu1  ;;  %v4043_v24 = vpop.f32.mrb[54].mxu0 }
 0xa4f   : > { %v4041_v25 = vadd.f32 %v4040_v21, %v3972_v23  ;;  %v5256_v26 = vpop.f32.mrb[57].mxu1  ;;  %v5269_v27 = vpop.f32.mrb[55].mxu0 }
 0xa50   : > { %v3975_v28 = vpop.f32.mrb[58].mxu1 }
 0xa51   : > { %v4051_v29 = vadd.f32 %v4648_v7, %v4041_v25  ;;  %v4044_v30 = vadd.f32 %v4043_v24, %v3975_v28  ;;  %v5257_v31 = vpop.f32.mrb[59].mxu1 }
 0xa53   : > { %v4053_v32 = vmax.f32 %v4051_v29, 0.0  ;;  %v4052_v40 = vadd.f32 %v4648_v7, %v4044_v30 }
 0xa55   : > { %v4055_v35 = vadd.f32 %v4053_v32, %v3713_v52  ;;  %v4054_v42 = vmax.f32 %v4052_v40, 0.0 }
 0xa57   : > { %v4057_v43 = vmax.f32 %v4055_v35, 0.0  ;;  %v4056_v46 = vadd.f32 %v4054_v42, %v3714_v58 }
 0xa59   : > { %4059 = vst.msk [vmem:[#allocation2 + $0x8] sm:$0xff] %vm415_vm2, %v4057_v43  ;;  %v4058_v47 = vmax.f32 %v4056_v46, 0.0 }
 0xa5b   : > { %4060 = vst.msk [vmem:[#allocation2 + $0x10] sm:$0xff] %vm415_vm2, %v4058_v47 }
 0xa62   : > { %v4061_v33 = vld [vmem:[#allocation2 + $0x17] sm:$0x1] }
 0xa63   : > { %v4070_v14 = vpack.c.bf16 %v4061_v33, %v4061_v33 }
 0xa65   : > { %5279 = vmatmul.mubr.msk.bf16.vlgmr.msra.gmra.mrb[60].mxu1 %vm415_vm2, %v4070_v14 }
 0xb38   : > { %v4133_v48 = vpop.f32.mrb[60].mxu1 }
 0xb39   : > { %v4134_v49 = vadd.f32 %v4133_v48, %v4071_v15  ;;  %v5280_v53 = vpop.f32.mrb[61].mxu1 }
 0xb3a   : > { %v4136_v52 = vpop.f32.mrb[62].mxu1 }
 0xb3b   : > { %v5281_v54 = vpop.f32.mrb[63].mxu1  ;;  %4140 = vst.msk [vmem:[%s408_s24] sm:$0x1] %vm4139_vm3, %v4134_v49 }
 0xb3c   : > { %5674 = shalt.err (!%p5671_p11)
}
 0xb3d   : > { %s5675_s13 = scalar_lea.hbm %s6730_s12, 16  ;;  %s5679_s22 = scalar_lea.hbm %s6783_s11, 32 }
 0xb3e   : > { %p5676_p13 = scmp.ne.s32.totalorder %s6730_s12, %s5675_s13  ;;  %p5680_p6 = scmp.lt.u32.totalorder %s6730_s12, %s6783_s11 }
 0xb3f   : > { %p5681_p9 = scmp.lt.u32.totalorder %s5679_s22, %s5675_s13  ;;  %p5683_p10 = scmp.lt.u32.totalorder %s5675_s13, %s6730_s12 }
 0xb40   : > { %p5677_p5 = pnand %p5676_p13, %p6806_p1 }
 0xb41   : > { %p5682_p12 = por %p5681_p9, %p5680_p6 }
 0xb42   : > { %p5678_p0 = pneg %p5677_p5 }
 0xb43   : > { %p5684_p2 = por %p5683_p10, %p5682_p12 }
 0xb45   : > { %p5685_p3 = pnand %p5684_p2, %p5678_p0 }
 0xb47   : > { %5688 = shalt.err (!%p5685_p3)
}
 0xb48   : > { %5301 = dma.vmem_to_hbm [thread:$0]  (%p6806_p1), %s6732_s25, 16, %s6730_s12, %s4142_s21  }
 0xb49 PF: > { %s6807_s24 = sld [smem:[#allocation12_spill]]  ;;  %s6808_s30 = sld [smem:[#allocation16_spill]] }
 0xb4a   : > { %p5318_p4 = scmp.ge.s32.totalorder %s5731_s20, 2 }
 0xb4f   : > { %s4166_s14 = sand.u32 1, %s6807_s24   ;;  %p6809_p7 = scmp.ne.s32.totalorder %s6808_s30, 0 }
 0xb50   : > { %s4167_s17 = scalar_lea.sflag [#allocation5], %s4166_s14 }
 0xb51   : > { %p5311_p8 = pnand %p5318_p4, %p6809_p7 }
 0xb53   : > { %5714 = dma.done.wait (!%p5311_p8), %s4167_s17, 16  }
 0xb54   : > { %5716 = vsyncadd (!%p5311_p8), %s4167_s17, 4294967280  ;;  %s6810_s20 = sld [smem:[#allocation14_spill]]  ;;  %s6811_s23 = sld [smem:[#allocation13_spill]] }
 0xb55   : > { %s6812_s19 = sld [smem:[#allocation15_spill]]  ;;  %s6813_s17 = smov %s5723_s18 }
 0xb5a   : > { %p23_p11 = scmp.ge.s32.totalorder %s6810_s20, 4   ;;  %s6814_s18 = smov %s6811_s23 }
 0xb5c   :  { %25 = sbr.rel (!%p23_p11) target bundleno = 5 (0x5), region = 125 }
 0xb63   :  { %4171 = vsyncpa [#allocation4], 1 }
 0xb64   :  { %4173 = vsyncpa [#allocation4 + $0x1], 1 }
 0xb65   :  { %4174 = vsyncpa [#allocation7], 1 }
 0xb66   :  { %4175 = vsyncpa [#allocation5], 1 }
 0xb67   :  { %4177 = vsyncpa [#allocation5 + $0x1], 1 }

</bundles_post_ra>
